<compile_context>
chip_gen: v7x
topology: tpu7x:2x2x1
jax: 0.10.0
libtpu: 0.0.40
codegen_flags: <defaults>
</compile_context>

<pallas_src>
import functools

import jax
import jax.numpy as jnp
from jax.experimental import pallas as pl
from jax.experimental.pallas import tpu as pltpu


def _round_up(v, m):
    return (v + m - 1) // m * m


def _tpu_kind():
    try:
        devs = jax.devices()
        return devs[0].device_kind.lower() if devs else ""
    except Exception:  # pragma: no cover
        return ""


def _sru_scan_kernel(*refs, k, d_tile, t_block, b_pad, n_in_pad, length,
                     activation_type, mxu_dtype):
    """grid = (d_pad // d_tile, L_pad // t_block); time (axis 1) is serial."""
    if k == 3:
        x_ref, xhw_ref, w_ref, b_ref, c0_ref, h_ref, clast_ref, c_scr = refs
    else:
        x_ref, w_ref, b_ref, c0_ref, h_ref, clast_ref, c_scr = refs
        xhw_ref = None

    tb = pl.program_id(1)          # time block ("arbitrary" / serial)

    # First time-block of every hidden tile starts the carry from c0.
    @pl.when(tb == 0)
    def _():
        c_scr[...] = c0_ref[...].astype(jnp.float32)

    rows = t_block * b_pad

    # ---- one fused matmul for all k gate components of this hidden tile (MXU) ----
    x2d = x_ref[...].reshape(rows, n_in_pad)
    if x2d.dtype != mxu_dtype:
        x2d = x2d.astype(mxu_dtype)
    u = jnp.dot(x2d, w_ref[...], preferred_element_type=jnp.float32)   # (rows, k*d_tile)

    u0 = u[:, 0 * d_tile:1 * d_tile]
    u1 = u[:, 1 * d_tile:2 * d_tile]
    u2 = u[:, 2 * d_tile:3 * d_tile]

    # ---- hoist every c-independent term out of the serial recurrence -------------
    g1 = jax.nn.sigmoid(u1 + b_ref[0:1, :])
    g2 = jax.nn.sigmoid(u2 + b_ref[1:2, :])
    a = u0 * (1.0 - g1)                       # c_t = c_{t-1} * g1 + a
    if k == 4:
        xval = u[:, 3 * d_tile:4 * d_tile]
    else:
        xval = xhw_ref[...].reshape(rows, d_tile).astype(jnp.float32)
    e = xval * (1.0 - g2)                     # h_t = act(c_t) * g2 + e

    s_last = (length - 1) % t_block
    tb_last = (length - 1) // t_block

    # ---- elementwise recurrence, statically unrolled over the time block ---------
    c = c_scr[...]
    for s in range(t_block):
        r0, r1 = s * b_pad, (s + 1) * b_pad   # static, sublane-aligned row slices
        c = c * g1[r0:r1] + a[r0:r1]

        if activation_type == 1:
            val = jnp.tanh(c)
        elif activation_type == 2:
            val = jnp.maximum(c, 0.0)
        else:
            val = c
        h_ref[s, :, :] = (val * g2[r0:r1] + e[r0:r1]).astype(h_ref.dtype)

        if s == s_last:                       # single write of the last *real* c
            @pl.when(tb == tb_last)
            def _(c_cur=c):
                clast_ref[...] = c_cur.astype(clast_ref.dtype)

    c_scr[...] = c                            # carry across time blocks


def sru_cell_forward(x, weight, bias, c0=None, *, n_out, activation_type=1,
                     t_block=None, d_tile=None, mxu_dtype=jnp.bfloat16):
    """x: (L, B, n_in); weight: (n_in, n_out*k); bias: (2*n_out,)."""
    L, B, n_in = x.shape
    d = n_out
    k = weight.shape[1] // d
    assert k in (3, 4) and weight.shape == (n_in, k * d)
    if k == 3 and n_in != d:
        raise ValueError("k == 3 (highway on raw input) requires n_in == n_out")
    if c0 is None:
        c0 = jnp.zeros((B, d), dtype=jnp.float32)

    kind = _tpu_kind()
    is_v5 = "v5" in kind
    is_v7 = "v7" in kind

    # Ship x in the MXU dtype only when the highway does not read it (k == 4);
    # for k == 3 keep f32 so the highway term matches the CUDA reference exactly.
    x_ship_dtype = mxu_dtype if k == 4 else jnp.float32
    b_align = 16 if jnp.dtype(x_ship_dtype).itemsize < 4 else 8

    # ---- pad to TPU tiles ------------------------------------------------------
    b_pad = _round_up(B, b_align)
    d_pad = _round_up(d, 128)
    n_in_pad = _round_up(n_in, 128)
    if k == 3:                                  # keep highway lane-slices aligned
        d_pad = n_in_pad = max(d_pad, n_in_pad)

    if d_tile is None:
        cap = 256 if is_v5 else 512             # v5e: 16 MiB scoped VMEM, 128-wide MXU
        d_tile = min(d_pad, cap)
        while d_pad % d_tile:
            d_tile -= 128
        if is_v7 and d_pad == d_tile and d_pad >= 256:
            # v7x has 2 TensorCores: keep >= 2 tiles on the "parallel" dj axis.
            t = (d_pad // 2) // 128 * 128
            while t >= 128 and d_pad % t:
                t -= 128
            if t >= 128:
                d_tile = t
    assert d_tile % 128 == 0 and d_pad % d_tile == 0
    n_dt = d_pad // d_tile

    if t_block is None:
        rows_target = 256 if is_v5 else 512     # MXU LHS rows per grid step
        t_block = max(1, min(L, rows_target // b_pad))
        n_tb = -(-L // t_block)
        t_block = -(-L // n_tb)                 # rebalance to minimize L padding
    L_pad = _round_up(L, t_block)

    # Weight columns are laid out as [j*k + i]; regroup so each dj tile's k gate
    # blocks are lane-contiguous: one wide (n_in_pad, k*d_tile) MXU operand per tile.
    w = weight.reshape(n_in, d, k).transpose(2, 0, 1)               # (k, n_in, d)
    w = jnp.pad(w, ((0, 0), (0, n_in_pad - n_in), (0, d_pad - d)))
    w = w.reshape(k, n_in_pad, n_dt, d_tile).transpose(1, 2, 0, 3)  # (n_in, dt, k, dt_w)
    w = w.reshape(n_in_pad, n_dt * k * d_tile).astype(mxu_dtype)

    b2d = jnp.pad(bias.astype(jnp.float32).reshape(2, d), ((0, 0), (0, d_pad - d)))
    x_p = jnp.pad(x, ((0, L_pad - L), (0, b_pad - B), (0, n_in_pad - n_in))
                  ).astype(x_ship_dtype)
    c0_p = jnp.pad(c0.astype(jnp.float32), ((0, b_pad - B), (0, d_pad - d)))

    kernel = functools.partial(
        _sru_scan_kernel, k=k, d_tile=d_tile, t_block=t_block, b_pad=b_pad,
        n_in_pad=n_in_pad, length=L, activation_type=activation_type,
        mxu_dtype=mxu_dtype)

    grid = (n_dt, L_pad // t_block)
    vmem_limit = (48 << 20) if is_v7 else ((64 << 20) if (is_v5 or "v6" in kind) else None)

    inputs = [x_p] + ([x_p] if k == 3 else []) + [w, b2d, c0_p]

    def _call(single_buffer):
        # Loop-invariant operands (weight / bias / c0) only change with dj (outer,
        # slow axis) -> single-buffer them to halve their VMEM footprint.
        inv = {"pipeline_mode": pl.Buffered(1)} if single_buffer else {}
        in_specs = [pl.BlockSpec((t_block, b_pad, n_in_pad), lambda dj, tb: (tb, 0, 0))]
        if k == 3:  # lane-aligned highway block (no in-kernel dynamic lane slice)
            in_specs.append(
                pl.BlockSpec((t_block, b_pad, d_tile), lambda dj, tb: (tb, 0, dj)))
        in_specs += [
            pl.BlockSpec((n_in_pad, k * d_tile), lambda dj, tb: (0, dj), **inv),
            pl.BlockSpec((2, d_tile), lambda dj, tb: (0, dj), **inv),
            pl.BlockSpec((b_pad, d_tile), lambda dj, tb: (0, dj), **inv),
        ]
        return pl.pallas_call(
            kernel,
            out_shape=(jax.ShapeDtypeStruct((L_pad, b_pad, d_pad), x.dtype),
                       jax.ShapeDtypeStruct((b_pad, d_pad), x.dtype)),
            grid_spec=pltpu.PrefetchScalarGridSpec(
                num_scalar_prefetch=0,
                grid=grid,
                in_specs=in_specs,
                out_specs=(
                    pl.BlockSpec((t_block, b_pad, d_tile), lambda dj, tb: (tb, 0, dj)),
                    pl.BlockSpec((b_pad, d_tile), lambda dj, tb: (0, dj)),
                ),
                scratch_shapes=[pltpu.VMEM((b_pad, d_tile), jnp.float32)]),
            compiler_params=pltpu.CompilerParams(
                dimension_semantics=("parallel", "arbitrary"),
                vmem_limit_bytes=vmem_limit),
        )(*inputs)

    try:
        h_p, c_last_p = _call(True)
    except Exception:
        # Fallback for jax versions without per-BlockSpec pipeline_mode support:
        # loop-invariant operands fall back to default double-buffering.
        h_p, c_last_p = _call(False)

    # TODO(synk): for very large n_in (n_in_pad >= ~2048 with k==4) on v7x (64 MiB
    # VMEM) add a K grid axis that tiles the weight over n_in with an f32 u
    # accumulator; and optionally an fp8 weight path (wrapper-side quantize + scale
    # folded into u) for v7x inference.
    return h_p[:L, :B, :d], c_last_p[:B, :d]


def sru_ref(x, weight, bias, c0, *, n_out, activation_type=1, matmul_dtype=None):
    """Pure-JAX reference mirroring the CUDA sru_fwd kernel."""
    L, B, n_in = x.shape
    d = n_out
    k = weight.shape[1] // d
    xm, wm = x.reshape(-1, n_in), weight
    if matmul_dtype is not None:
        xm, wm = xm.astype(matmul_dtype), wm.astype(matmul_dtype)
    u = jnp.dot(xm, wm, preferred_element_type=jnp.float32).reshape(L, B, d, k)
    b1, b2 = bias[:d], bias[d:]
    act = {0: (lambda v: v), 1: jnp.tanh, 2: (lambda v: jnp.maximum(v, 0.0))}[activation_type]
    c = c0.astype(jnp.float32)
    hs = []
    for t in range(L):
        g1 = jax.nn.sigmoid(u[t, :, :, 1] + b1)
        g2 = jax.nn.sigmoid(u[t, :, :, 2] + b2)
        c = (c - u[t, :, :, 0]) * g1 + u[t, :, :, 0]
        xval = u[t, :, :, 3] if k == 4 else x[t]
        hs.append(act(c) * g2 + xval * (1.0 - g2))
    return jnp.stack(hs), c


def make_params(key, n_in, n_out):
    """Deterministic init matching SRUCell.init_weight() (unidirectional)."""
    k = 4 if n_in != n_out else 3
    val_range = (3.0 / n_in) ** 0.5
    weight = jax.random.uniform(key, (n_in, n_out * k), minval=-val_range,
                                maxval=val_range, dtype=jnp.float32)
    bias = jnp.zeros((n_out * 2,), dtype=jnp.float32)   # init_weight zeros the bias
    return weight, bias


if __name__ == "__main__":
    key = jax.random.PRNGKey(0)
    k1, k2, k3, k4, k5, k6, k7 = jax.random.split(key, 7)

    # Case 1: n_in == n_out -> k = 3 (highway on raw input), exact f32 MXU path,
    # default zero c0, zero bias.  Shapes get padded to (8, 128) inside the wrapper.
    L, B, n_in, n_out = 8, 2, 32, 32
    w, b = make_params(k1, n_in, n_out)
    x = jax.random.normal(k2, (L, B, n_in), dtype=jnp.float32)
    h, c = sru_cell_forward(x, w, b, n_out=n_out, activation_type=1,
                            mxu_dtype=jnp.float32)
    jax.block_until_ready((h, c))
    h_r, c_r = sru_ref(x, w, b, jnp.zeros((B, n_out), jnp.float32),
                       n_out=n_out, activation_type=1)
    assert h.shape == (L, B, n_out) and c.shape == (B, n_out)
    assert jnp.allclose(h, h_r, atol=1e-4, rtol=1e-4)
    assert jnp.allclose(c, c_r, atol=1e-4, rtol=1e-4)

    # Case 2: n_in != n_out -> k = 4, bf16 x + weight on the MXU, two hidden tiles,
    # time-block padding (L=10, t_block=4), nonzero bias / c0.
    L, B, n_in, n_out = 10, 8, 64, 256
    w, b = make_params(k3, n_in, n_out)
    b = jax.random.uniform(k4, b.shape, minval=-0.5, maxval=0.5, dtype=jnp.float32)
    x = jax.random.normal(k5, (L, B, n_in), dtype=jnp.float32)
    c0 = jax.random.normal(k6, (B, n_out), dtype=jnp.float32)
    h, c = sru_cell_forward(x, w, b, c0, n_out=n_out, activation_type=1,
                            t_block=4, d_tile=128, mxu_dtype=jnp.bfloat16)
    jax.block_until_ready((h, c))
    h_r, c_r = sru_ref(x, w, b, c0, n_out=n_out, activation_type=1,
                       matmul_dtype=jnp.bfloat16)
    assert jnp.allclose(h, h_r, atol=1e-3, rtol=1e-3)
    assert jnp.allclose(c, c_r, atol=1e-3, rtol=1e-3)

    # Case 3: k = 3 with a padded multi-tile hidden dim (d=160 -> 2 x 128 tiles),
    # ReLU activation, bf16 MXU operands (f32 highway input).
    L, B, n_in, n_out = 5, 3, 160, 160
    w, b = make_params(k7, n_in, n_out)
    x = jax.random.normal(k2, (L, B, n_in), dtype=jnp.float32)
    c0 = jax.random.normal(k3, (B, n_out), dtype=jnp.float32)
    h, c = sru_cell_forward(x, w, b, c0, n_out=n_out, activation_type=2,
                            d_tile=128, mxu_dtype=jnp.bfloat16)
    jax.block_until_ready((h, c))
    h_r, c_r = sru_ref(x, w, b, c0, n_out=n_out, activation_type=2,
                       matmul_dtype=jnp.bfloat16)
    assert jnp.allclose(h, h_r, atol=1e-3, rtol=1e-3)
    assert jnp.allclose(c, c_r, atol=1e-3, rtol=1e-3)

    # TODO(synk): training-mode dropout / rnn_dropout masks, the bidirectional
    # (sru_bi_fwd) path, and the backward kernels (sru_bwd / sru_bi_bwd) are not
    # implemented (forward, eval only).
    print("KERNEL_OK")
</pallas_src>

<mosaic_0001>
module attributes {stable_mosaic.version = 11 : i64} {
  func.func @_sru_scan_kernel(%arg0: i32, %arg1: i32, %arg2: memref<8x8x128xf32, #tpu.memory_space<vmem>>, %arg3: memref<8x8x128xf32, #tpu.memory_space<vmem>>, %arg4: memref<128x384xf32, #tpu.memory_space<vmem>>, %arg5: memref<2x128xf32, #tpu.memory_space<vmem>>, %arg6: memref<8x128xf32, #tpu.memory_space<vmem>>, %arg7: memref<8x8x128xf32, #tpu.memory_space<vmem>>, %arg8: memref<8x128xf32, #tpu.memory_space<vmem>>, %arg9: memref<8x128xf32, #tpu.memory_space<vmem>>) attributes {dimension_semantics = [#tpu.dimension_semantics<parallel>, #tpu.dimension_semantics<arbitrary>], iteration_bounds = array<i64: 1, 1>, scalar_prefetch = 0 : i64, scratch_operands = 1 : i64, tpu.core_type = #tpu.core_type<tc>, window_params = [{transform_indices = @transform_0, window_bounds = array<i64: 8, 8, 128>}, {transform_indices = @transform_1, window_bounds = array<i64: 8, 8, 128>}, {pipeline_mode = #tpu.pipeline_mode<synchronous>, transform_indices = @transform_2, window_bounds = array<i64: 128, 384>}, {pipeline_mode = #tpu.pipeline_mode<synchronous>, transform_indices = @transform_3, window_bounds = array<i64: 2, 128>}, {pipeline_mode = #tpu.pipeline_mode<synchronous>, transform_indices = @transform_4, window_bounds = array<i64: 8, 128>}, {transform_indices = @transform_5, window_bounds = array<i64: 8, 8, 128>}, {transform_indices = @transform_6, window_bounds = array<i64: 8, 128>}]} {
    %c0_i32 = arith.constant 0 : i32
    %0 = arith.cmpi eq, %arg1, %c0_i32 : i32
    %1 = arith.extui %0 : i1 to i32
    %c0_i32_0 = arith.constant 0 : i32
    %2 = arith.cmpi ne, %1, %c0_i32_0 : i32
    scf.if %2 {
      %c0_39 = arith.constant 0 : index
      %c0_40 = arith.constant 0 : index
      %135 = vector.load %arg6[%c0_39, %c0_40] : memref<8x128xf32, #tpu.memory_space<vmem>>, vector<8x128xf32>
      %c0_41 = arith.constant 0 : index
      %c0_42 = arith.constant 0 : index
      %136 = vector.load %arg9[%c0_41, %c0_42] : memref<8x128xf32, #tpu.memory_space<vmem>>, vector<8x128xf32>
      tpu.vector_store %arg9[%c0_41, %c0_42], %135 {strides = array<i32>} : memref<8x128xf32, #tpu.memory_space<vmem>>, vector<8x128xf32>,
    } else {
    }
    %c0 = arith.constant 0 : index
    %c0_1 = arith.constant 0 : index
    %c0_2 = arith.constant 0 : index
    %3 = vector.load %arg2[%c0, %c0_1, %c0_2] : memref<8x8x128xf32, #tpu.memory_space<vmem>>, vector<8x8x128xf32>
    %4 = vector.shape_cast %3 : vector<8x8x128xf32> to vector<64x128xf32>
    %c0_3 = arith.constant 0 : index
    %c0_4 = arith.constant 0 : index
    %5 = vector.load %arg4[%c0_3, %c0_4] : memref<128x384xf32, #tpu.memory_space<vmem>>, vector<128x384xf32>
    %cst = arith.constant dense<0.000000e+00> : vector<64x384xf32>
    %6 = tpu.matmul %4, %5, %cst {dimension_numbers = #tpu.dot_dimension_numbers<[1], [0], [0], [1], [0, 0, 1, 1], [], []>} : vector<64x128xf32>, vector<128x384xf32>, vector<64x384xf32> -> vector<64x384xf32>
    %7 = vector.extract_strided_slice %6 {offsets = [0, 0], sizes = [64, 128], strides = [1, 1]} : vector<64x384xf32> to vector<64x128xf32>
    %8 = vector.extract_strided_slice %6 {offsets = [0, 128], sizes = [64, 128], strides = [1, 1]} : vector<64x384xf32> to vector<64x128xf32>
    %9 = vector.extract_strided_slice %6 {offsets = [0, 256], sizes = [64, 128], strides = [1, 1]} : vector<64x384xf32> to vector<64x128xf32>
    %c0_5 = arith.constant 0 : index
    %c0_6 = arith.constant 0 : index
    %10 = vector.load %arg5[%c0_5, %c0_6] : memref<2x128xf32, #tpu.memory_space<vmem>>, vector<1x128xf32>
    %11 = vector.broadcast %10 : vector<1x128xf32> to vector<64x128xf32>
    %12 = arith.addf %8, %11 : vector<64x128xf32>
    %13 = arith.negf %12 : vector<64x128xf32>
    %14 = math.exp %13 : vector<64x128xf32>
    %cst_7 = arith.constant 1.000000e+00 : f32
    %15 = vector.broadcast %cst_7 : f32 to vector<64x128xf32>
    %16 = arith.addf %15, %14 : vector<64x128xf32>
    %17 = arith.divf %15, %16 : vector<64x128xf32>
    %c1 = arith.constant 1 : index
    %c0_8 = arith.constant 0 : index
    %18 = vector.load %arg5[%c1, %c0_8] : memref<2x128xf32, #tpu.memory_space<vmem>>, vector<1x128xf32>
    %19 = vector.broadcast %18 : vector<1x128xf32> to vector<64x128xf32>
    %20 = arith.addf %9, %19 : vector<64x128xf32>
    %21 = arith.negf %20 : vector<64x128xf32>
    %22 = math.exp %21 : vector<64x128xf32>
    %cst_9 = arith.constant 1.000000e+00 : f32
    %23 = vector.broadcast %cst_9 : f32 to vector<64x128xf32>
    %24 = arith.addf %23, %22 : vector<64x128xf32>
    %25 = arith.divf %23, %24 : vector<64x128xf32>
    %cst_10 = arith.constant 1.000000e+00 : f32
    %26 = vector.broadcast %cst_10 : f32 to vector<64x128xf32>
    %27 = arith.subf %26, %17 : vector<64x128xf32>
    %28 = arith.mulf %7, %27 : vector<64x128xf32>
    %c0_11 = arith.constant 0 : index
    %c0_12 = arith.constant 0 : index
    %c0_13 = arith.constant 0 : index
    %29 = vector.load %arg3[%c0_11, %c0_12, %c0_13] : memref<8x8x128xf32, #tpu.memory_space<vmem>>, vector<8x8x128xf32>
    %30 = vector.shape_cast %29 : vector<8x8x128xf32> to vector<64x128xf32>
    %cst_14 = arith.constant 1.000000e+00 : f32
    %31 = vector.broadcast %cst_14 : f32 to vector<64x128xf32>
    %32 = arith.subf %31, %25 : vector<64x128xf32>
    %33 = arith.mulf %30, %32 : vector<64x128xf32>
    %c0_15 = arith.constant 0 : index
    %c0_16 = arith.constant 0 : index
    %34 = vector.load %arg9[%c0_15, %c0_16] : memref<8x128xf32, #tpu.memory_space<vmem>>, vector<8x128xf32>
    %35 = vector.extract_strided_slice %17 {offsets = [0, 0], sizes = [8, 128], strides = [1, 1]} : vector<64x128xf32> to vector<8x128xf32>
    %36 = arith.mulf %34, %35 : vector<8x128xf32>
    %37 = vector.extract_strided_slice %28 {offsets = [0, 0], sizes = [8, 128], strides = [1, 1]} : vector<64x128xf32> to vector<8x128xf32>
    %38 = arith.addf %36, %37 : vector<8x128xf32>
    %39 = math.tanh %38 : vector<8x128xf32>
    %40 = vector.extract_strided_slice %25 {offsets = [0, 0], sizes = [8, 128], strides = [1, 1]} : vector<64x128xf32> to vector<8x128xf32>
    %41 = arith.mulf %39, %40 : vector<8x128xf32>
    %42 = vector.extract_strided_slice %33 {offsets = [0, 0], sizes = [8, 128], strides = [1, 1]} : vector<64x128xf32> to vector<8x128xf32>
    %43 = arith.addf %41, %42 : vector<8x128xf32>
    %c0_17 = arith.constant 0 : index
    %c0_18 = arith.constant 0 : index
    %c0_19 = arith.constant 0 : index
    %44 = vector.load %arg7[%c0_17, %c0_18, %c0_19] : memref<8x8x128xf32, #tpu.memory_space<vmem>>, vector<1x8x128xf32>
    %45 = vector.shape_cast %44 : vector<1x8x128xf32> to vector<8x128xf32>
    %46 = vector.shape_cast %43 : vector<8x128xf32> to vector<1x8x128xf32>
    tpu.vector_store %arg7[%c0_17, %c0_18, %c0_19], %46 {strides = array<i32>} : memref<8x8x128xf32, #tpu.memory_space<vmem>>, vector<1x8x128xf32>,
    %47 = vector.extract_strided_slice %17 {offsets = [8, 0], sizes = [8, 128], strides = [1, 1]} : vector<64x128xf32> to vector<8x128xf32>
    %48 = arith.mulf %38, %47 : vector<8x128xf32>
    %49 = vector.extract_strided_slice %28 {offsets = [8, 0], sizes = [8, 128], strides = [1, 1]} : vector<64x128xf32> to vector<8x128xf32>
    %50 = arith.addf %48, %49 : vector<8x128xf32>
    %51 = math.tanh %50 : vector<8x128xf32>
    %52 = vector.extract_strided_slice %25 {offsets = [8, 0], sizes = [8, 128], strides = [1, 1]} : vector<64x128xf32> to vector<8x128xf32>
    %53 = arith.mulf %51, %52 : vector<8x128xf32>
    %54 = vector.extract_strided_slice %33 {offsets = [8, 0], sizes = [8, 128], strides = [1, 1]} : vector<64x128xf32> to vector<8x128xf32>
    %55 = arith.addf %53, %54 : vector<8x128xf32>
    %c1_20 = arith.constant 1 : index
    %c0_21 = arith.constant 0 : index
    %c0_22 = arith.constant 0 : index
    %56 = vector.load %arg7[%c1_20, %c0_21, %c0_22] : memref<8x8x128xf32, #tpu.memory_space<vmem>>, vector<1x8x128xf32>
    %57 = vector.shape_cast %56 : vector<1x8x128xf32> to vector<8x128xf32>
    %58 = vector.shape_cast %55 : vector<8x128xf32> to vector<1x8x128xf32>
    tpu.vector_store %arg7[%c1_20, %c0_21, %c0_22], %58 {strides = array<i32>} : memref<8x8x128xf32, #tpu.memory_space<vmem>>, vector<1x8x128xf32>,
    %59 = vector.extract_strided_slice %17 {offsets = [16, 0], sizes = [8, 128], strides = [1, 1]} : vector<64x128xf32> to vector<8x128xf32>
    %60 = arith.mulf %50, %59 : vector<8x128xf32>
    %61 = vector.extract_strided_slice %28 {offsets = [16, 0], sizes = [8, 128], strides = [1, 1]} : vector<64x128xf32> to vector<8x128xf32>
    %62 = arith.addf %60, %61 : vector<8x128xf32>
    %63 = math.tanh %62 : vector<8x128xf32>
    %64 = vector.extract_strided_slice %25 {offsets = [16, 0], sizes = [8, 128], strides = [1, 1]} : vector<64x128xf32> to vector<8x128xf32>
    %65 = arith.mulf %63, %64 : vector<8x128xf32>
    %66 = vector.extract_strided_slice %33 {offsets = [16, 0], sizes = [8, 128], strides = [1, 1]} : vector<64x128xf32> to vector<8x128xf32>
    %67 = arith.addf %65, %66 : vector<8x128xf32>
    %c2 = arith.constant 2 : index
    %c0_23 = arith.constant 0 : index
    %c0_24 = arith.constant 0 : index
    %68 = vector.load %arg7[%c2, %c0_23, %c0_24] : memref<8x8x128xf32, #tpu.memory_space<vmem>>, vector<1x8x128xf32>
    %69 = vector.shape_cast %68 : vector<1x8x128xf32> to vector<8x128xf32>
    %70 = vector.shape_cast %67 : vector<8x128xf32> to vector<1x8x128xf32>
    tpu.vector_store %arg7[%c2, %c0_23, %c0_24], %70 {strides = array<i32>} : memref<8x8x128xf32, #tpu.memory_space<vmem>>, vector<1x8x128xf32>,
    %71 = vector.extract_strided_slice %17 {offsets = [24, 0], sizes = [8, 128], strides = [1, 1]} : vector<64x128xf32> to vector<8x128xf32>
    %72 = arith.mulf %62, %71 : vector<8x128xf32>
    %73 = vector.extract_strided_slice %28 {offsets = [24, 0], sizes = [8, 128], strides = [1, 1]} : vector<64x128xf32> to vector<8x128xf32>
    %74 = arith.addf %72, %73 : vector<8x128xf32>
    %75 = math.tanh %74 : vector<8x128xf32>
    %76 = vector.extract_strided_slice %25 {offsets = [24, 0], sizes = [8, 128], strides = [1, 1]} : vector<64x128xf32> to vector<8x128xf32>
    %77 = arith.mulf %75, %76 : vector<8x128xf32>
    %78 = vector.extract_strided_slice %33 {offsets = [24, 0], sizes = [8, 128], strides = [1, 1]} : vector<64x128xf32> to vector<8x128xf32>
    %79 = arith.addf %77, %78 : vector<8x128xf32>
    %c3 = arith.constant 3 : index
    %c0_25 = arith.constant 0 : index
    %c0_26 = arith.constant 0 : index
    %80 = vector.load %arg7[%c3, %c0_25, %c0_26] : memref<8x8x128xf32, #tpu.memory_space<vmem>>, vector<1x8x128xf32>
    %81 = vector.shape_cast %80 : vector<1x8x128xf32> to vector<8x128xf32>
    %82 = vector.shape_cast %79 : vector<8x128xf32> to vector<1x8x128xf32>
    tpu.vector_store %arg7[%c3, %c0_25, %c0_26], %82 {strides = array<i32>} : memref<8x8x128xf32, #tpu.memory_space<vmem>>, vector<1x8x128xf32>,
    %83 = vector.extract_strided_slice %17 {offsets = [32, 0], sizes = [8, 128], strides = [1, 1]} : vector<64x128xf32> to vector<8x128xf32>
    %84 = arith.mulf %74, %83 : vector<8x128xf32>
    %85 = vector.extract_strided_slice %28 {offsets = [32, 0], sizes = [8, 128], strides = [1, 1]} : vector<64x128xf32> to vector<8x128xf32>
    %86 = arith.addf %84, %85 : vector<8x128xf32>
    %87 = math.tanh %86 : vector<8x128xf32>
    %88 = vector.extract_strided_slice %25 {offsets = [32, 0], sizes = [8, 128], strides = [1, 1]} : vector<64x128xf32> to vector<8x128xf32>
    %89 = arith.mulf %87, %88 : vector<8x128xf32>
    %90 = vector.extract_strided_slice %33 {offsets = [32, 0], sizes = [8, 128], strides = [1, 1]} : vector<64x128xf32> to vector<8x128xf32>
    %91 = arith.addf %89, %90 : vector<8x128xf32>
    %c4 = arith.constant 4 : index
    %c0_27 = arith.constant 0 : index
    %c0_28 = arith.constant 0 : index
    %92 = vector.load %arg7[%c4, %c0_27, %c0_28] : memref<8x8x128xf32, #tpu.memory_space<vmem>>, vector<1x8x128xf32>
    %93 = vector.shape_cast %92 : vector<1x8x128xf32> to vector<8x128xf32>
    %94 = vector.shape_cast %91 : vector<8x128xf32> to vector<1x8x128xf32>
    tpu.vector_store %arg7[%c4, %c0_27, %c0_28], %94 {strides = array<i32>} : memref<8x8x128xf32, #tpu.memory_space<vmem>>, vector<1x8x128xf32>,
    %95 = vector.extract_strided_slice %17 {offsets = [40, 0], sizes = [8, 128], strides = [1, 1]} : vector<64x128xf32> to vector<8x128xf32>
    %96 = arith.mulf %86, %95 : vector<8x128xf32>
    %97 = vector.extract_strided_slice %28 {offsets = [40, 0], sizes = [8, 128], strides = [1, 1]} : vector<64x128xf32> to vector<8x128xf32>
    %98 = arith.addf %96, %97 : vector<8x128xf32>
    %99 = math.tanh %98 : vector<8x128xf32>
    %100 = vector.extract_strided_slice %25 {offsets = [40, 0], sizes = [8, 128], strides = [1, 1]} : vector<64x128xf32> to vector<8x128xf32>
    %101 = arith.mulf %99, %100 : vector<8x128xf32>
    %102 = vector.extract_strided_slice %33 {offsets = [40, 0], sizes = [8, 128], strides = [1, 1]} : vector<64x128xf32> to vector<8x128xf32>
    %103 = arith.addf %101, %102 : vector<8x128xf32>
    %c5 = arith.constant 5 : index
    %c0_29 = arith.constant 0 : index
    %c0_30 = arith.constant 0 : index
    %104 = vector.load %arg7[%c5, %c0_29, %c0_30] : memref<8x8x128xf32, #tpu.memory_space<vmem>>, vector<1x8x128xf32>
    %105 = vector.shape_cast %104 : vector<1x8x128xf32> to vector<8x128xf32>
    %106 = vector.shape_cast %103 : vector<8x128xf32> to vector<1x8x128xf32>
    tpu.vector_store %arg7[%c5, %c0_29, %c0_30], %106 {strides = array<i32>} : memref<8x8x128xf32, #tpu.memory_space<vmem>>, vector<1x8x128xf32>,
    %107 = vector.extract_strided_slice %17 {offsets = [48, 0], sizes = [8, 128], strides = [1, 1]} : vector<64x128xf32> to vector<8x128xf32>
    %108 = arith.mulf %98, %107 : vector<8x128xf32>
    %109 = vector.extract_strided_slice %28 {offsets = [48, 0], sizes = [8, 128], strides = [1, 1]} : vector<64x128xf32> to vector<8x128xf32>
    %110 = arith.addf %108, %109 : vector<8x128xf32>
    %111 = math.tanh %110 : vector<8x128xf32>
    %112 = vector.extract_strided_slice %25 {offsets = [48, 0], sizes = [8, 128], strides = [1, 1]} : vector<64x128xf32> to vector<8x128xf32>
    %113 = arith.mulf %111, %112 : vector<8x128xf32>
    %114 = vector.extract_strided_slice %33 {offsets = [48, 0], sizes = [8, 128], strides = [1, 1]} : vector<64x128xf32> to vector<8x128xf32>
    %115 = arith.addf %113, %114 : vector<8x128xf32>
    %c6 = arith.constant 6 : index
    %c0_31 = arith.constant 0 : index
    %c0_32 = arith.constant 0 : index
    %116 = vector.load %arg7[%c6, %c0_31, %c0_32] : memref<8x8x128xf32, #tpu.memory_space<vmem>>, vector<1x8x128xf32>
    %117 = vector.shape_cast %116 : vector<1x8x128xf32> to vector<8x128xf32>
    %118 = vector.shape_cast %115 : vector<8x128xf32> to vector<1x8x128xf32>
    tpu.vector_store %arg7[%c6, %c0_31, %c0_32], %118 {strides = array<i32>} : memref<8x8x128xf32, #tpu.memory_space<vmem>>, vector<1x8x128xf32>,
    %119 = vector.extract_strided_slice %17 {offsets = [56, 0], sizes = [8, 128], strides = [1, 1]} : vector<64x128xf32> to vector<8x128xf32>
    %120 = arith.mulf %110, %119 : vector<8x128xf32>
    %121 = vector.extract_strided_slice %28 {offsets = [56, 0], sizes = [8, 128], strides = [1, 1]} : vector<64x128xf32> to vector<8x128xf32>
    %122 = arith.addf %120, %121 : vector<8x128xf32>
    %123 = math.tanh %122 : vector<8x128xf32>
    %124 = vector.extract_strided_slice %25 {offsets = [56, 0], sizes = [8, 128], strides = [1, 1]} : vector<64x128xf32> to vector<8x128xf32>
    %125 = arith.mulf %123, %124 : vector<8x128xf32>
    %126 = vector.extract_strided_slice %33 {offsets = [56, 0], sizes = [8, 128], strides = [1, 1]} : vector<64x128xf32> to vector<8x128xf32>
    %127 = arith.addf %125, %126 : vector<8x128xf32>
    %c7 = arith.constant 7 : index
    %c0_33 = arith.constant 0 : index
    %c0_34 = arith.constant 0 : index
    %128 = vector.load %arg7[%c7, %c0_33, %c0_34] : memref<8x8x128xf32, #tpu.memory_space<vmem>>, vector<1x8x128xf32>
    %129 = vector.shape_cast %128 : vector<1x8x128xf32> to vector<8x128xf32>
    %130 = vector.shape_cast %127 : vector<8x128xf32> to vector<1x8x128xf32>
    tpu.vector_store %arg7[%c7, %c0_33, %c0_34], %130 {strides = array<i32>} : memref<8x8x128xf32, #tpu.memory_space<vmem>>, vector<1x8x128xf32>,
    %c0_i32_35 = arith.constant 0 : i32
    %131 = arith.cmpi eq, %arg1, %c0_i32_35 : i32
    %132 = arith.extui %131 : i1 to i32
    %c0_i32_36 = arith.constant 0 : i32
    %133 = arith.cmpi ne, %132, %c0_i32_36 : i32
    scf.if %133 {
      %c0_39 = arith.constant 0 : index
      %c0_40 = arith.constant 0 : index
      %135 = vector.load %arg8[%c0_39, %c0_40] : memref<8x128xf32, #tpu.memory_space<vmem>>, vector<8x128xf32>
      tpu.vector_store %arg8[%c0_39, %c0_40], %122 {strides = array<i32>} : memref<8x128xf32, #tpu.memory_space<vmem>>, vector<8x128xf32>,
    } else {
    }
    %c0_37 = arith.constant 0 : index
    %c0_38 = arith.constant 0 : index
    %134 = vector.load %arg9[%c0_37, %c0_38] : memref<8x128xf32, #tpu.memory_space<vmem>>, vector<8x128xf32>
    tpu.vector_store %arg9[%c0_37, %c0_38], %122 {strides = array<i32>} : memref<8x128xf32, #tpu.memory_space<vmem>>, vector<8x128xf32>,
    return
  }
  func.func @transform_0(%arg0: i32, %arg1: i32) -> (i32, i32, i32) {
    %c0_i32 = arith.constant 0 : i32
    %c0_i32_0 = arith.constant 0 : i32
    %c0_i32_1 = arith.constant 0 : i32
    return %arg1, %c0_i32, %c0_i32_0 : i32, i32, i32
  }
  func.func @transform_1(%arg0: i32, %arg1: i32) -> (i32, i32, i32) {
    %c0_i32 = arith.constant 0 : i32
    %c0_i32_0 = arith.constant 0 : i32
    return %arg1, %c0_i32, %arg0 : i32, i32, i32
  }
  func.func @transform_2(%arg0: i32, %arg1: i32) -> (i32, i32) {
    %c0_i32 = arith.constant 0 : i32
    %c0_i32_0 = arith.constant 0 : i32
    return %c0_i32, %arg0 : i32, i32
  }
  func.func @transform_3(%arg0: i32, %arg1: i32) -> (i32, i32) {
    %c0_i32 = arith.constant 0 : i32
    %c0_i32_0 = arith.constant 0 : i32
    return %c0_i32, %arg0 : i32, i32
  }
  func.func @transform_4(%arg0: i32, %arg1: i32) -> (i32, i32) {
    %c0_i32 = arith.constant 0 : i32
    %c0_i32_0 = arith.constant 0 : i32
    return %c0_i32, %arg0 : i32, i32
  }
  func.func @transform_5(%arg0: i32, %arg1: i32) -> (i32, i32, i32) {
    %c0_i32 = arith.constant 0 : i32
    %c0_i32_0 = arith.constant 0 : i32
    return %arg1, %c0_i32, %arg0 : i32, i32, i32
  }
  func.func @transform_6(%arg0: i32, %arg1: i32) -> (i32, i32) {
    %c0_i32 = arith.constant 0 : i32
    %c0_i32_0 = arith.constant 0 : i32
    return %c0_i32, %arg0 : i32, i32
  }
}

module attributes {stable_mosaic.version = 11 : i64} {
  func.func @_sru_scan_kernel(%arg0: i32, %arg1: i32, %arg2: memref<8x8x128xf32, #tpu.memory_space<vmem>>, %arg3: memref<8x8x128xf32, #tpu.memory_space<vmem>>, %arg4: memref<128x384xf32, #tpu.memory_space<vmem>>, %arg5: memref<2x128xf32, #tpu.memory_space<vmem>>, %arg6: memref<8x128xf32, #tpu.memory_space<vmem>>, %arg7: memref<8x8x128xf32, #tpu.memory_space<vmem>>, %arg8: memref<8x128xf32, #tpu.memory_space<vmem>>, %arg9: memref<8x128xf32, #tpu.memory_space<vmem>>) attributes {dimension_semantics = [#tpu.dimension_semantics<parallel>, #tpu.dimension_semantics<arbitrary>], iteration_bounds = array<i64: 1, 1>, scalar_prefetch = 0 : i64, scratch_operands = 1 : i64, tpu.core_type = #tpu.core_type<tc>, window_params = [{transform_indices = @transform_0, window_bounds = array<i64: 8, 8, 128>}, {transform_indices = @transform_1, window_bounds = array<i64: 8, 8, 128>}, {transform_indices = @transform_2, window_bounds = array<i64: 128, 384>}, {transform_indices = @transform_3, window_bounds = array<i64: 2, 128>}, {transform_indices = @transform_4, window_bounds = array<i64: 8, 128>}, {transform_indices = @transform_5, window_bounds = array<i64: 8, 8, 128>}, {transform_indices = @transform_6, window_bounds = array<i64: 8, 128>}]} {
    %c0_i32 = arith.constant 0 : i32
    %0 = arith.cmpi eq, %arg1, %c0_i32 : i32
    %1 = arith.extui %0 : i1 to i32
    %c0_i32_0 = arith.constant 0 : i32
    %2 = arith.cmpi ne, %1, %c0_i32_0 : i32
    scf.if %2 {
      %c0_39 = arith.constant 0 : index
      %c0_40 = arith.constant 0 : index
      %135 = vector.load %arg6[%c0_39, %c0_40] : memref<8x128xf32, #tpu.memory_space<vmem>>, vector<8x128xf32>
      %c0_41 = arith.constant 0 : index
      %c0_42 = arith.constant 0 : index
      %136 = vector.load %arg9[%c0_41, %c0_42] : memref<8x128xf32, #tpu.memory_space<vmem>>, vector<8x128xf32>
      tpu.vector_store %arg9[%c0_41, %c0_42], %135 {strides = array<i32>} : memref<8x128xf32, #tpu.memory_space<vmem>>, vector<8x128xf32>,
    } else {
    }
    %c0 = arith.constant 0 : index
    %c0_1 = arith.constant 0 : index
    %c0_2 = arith.constant 0 : index
    %3 = vector.load %arg2[%c0, %c0_1, %c0_2] : memref<8x8x128xf32, #tpu.memory_space<vmem>>, vector<8x8x128xf32>
    %4 = vector.shape_cast %3 : vector<8x8x128xf32> to vector<64x128xf32>
    %c0_3 = arith.constant 0 : index
    %c0_4 = arith.constant 0 : index
    %5 = vector.load %arg4[%c0_3, %c0_4] : memref<128x384xf32, #tpu.memory_space<vmem>>, vector<128x384xf32>
    %cst = arith.constant dense<0.000000e+00> : vector<64x384xf32>
    %6 = tpu.matmul %4, %5, %cst {dimension_numbers = #tpu.dot_dimension_numbers<[1], [0], [0], [1], [0, 0, 1, 1], [], []>} : vector<64x128xf32>, vector<128x384xf32>, vector<64x384xf32> -> vector<64x384xf32>
    %7 = vector.extract_strided_slice %6 {offsets = [0, 0], sizes = [64, 128], strides = [1, 1]} : vector<64x384xf32> to vector<64x128xf32>
    %8 = vector.extract_strided_slice %6 {offsets = [0, 128], sizes = [64, 128], strides = [1, 1]} : vector<64x384xf32> to vector<64x128xf32>
    %9 = vector.extract_strided_slice %6 {offsets = [0, 256], sizes = [64, 128], strides = [1, 1]} : vector<64x384xf32> to vector<64x128xf32>
    %c0_5 = arith.constant 0 : index
    %c0_6 = arith.constant 0 : index
    %10 = vector.load %arg5[%c0_5, %c0_6] : memref<2x128xf32, #tpu.memory_space<vmem>>, vector<1x128xf32>
    %11 = vector.broadcast %10 : vector<1x128xf32> to vector<64x128xf32>
    %12 = arith.addf %8, %11 : vector<64x128xf32>
    %13 = arith.negf %12 : vector<64x128xf32>
    %14 = math.exp %13 : vector<64x128xf32>
    %cst_7 = arith.constant 1.000000e+00 : f32
    %15 = vector.broadcast %cst_7 : f32 to vector<64x128xf32>
    %16 = arith.addf %15, %14 : vector<64x128xf32>
    %17 = arith.divf %15, %16 : vector<64x128xf32>
    %c1 = arith.constant 1 : index
    %c0_8 = arith.constant 0 : index
    %18 = vector.load %arg5[%c1, %c0_8] : memref<2x128xf32, #tpu.memory_space<vmem>>, vector<1x128xf32>
    %19 = vector.broadcast %18 : vector<1x128xf32> to vector<64x128xf32>
    %20 = arith.addf %9, %19 : vector<64x128xf32>
    %21 = arith.negf %20 : vector<64x128xf32>
    %22 = math.exp %21 : vector<64x128xf32>
    %cst_9 = arith.constant 1.000000e+00 : f32
    %23 = vector.broadcast %cst_9 : f32 to vector<64x128xf32>
    %24 = arith.addf %23, %22 : vector<64x128xf32>
    %25 = arith.divf %23, %24 : vector<64x128xf32>
    %cst_10 = arith.constant 1.000000e+00 : f32
    %26 = vector.broadcast %cst_10 : f32 to vector<64x128xf32>
    %27 = arith.subf %26, %17 : vector<64x128xf32>
    %28 = arith.mulf %7, %27 : vector<64x128xf32>
    %c0_11 = arith.constant 0 : index
    %c0_12 = arith.constant 0 : index
    %c0_13 = arith.constant 0 : index
    %29 = vector.load %arg3[%c0_11, %c0_12, %c0_13] : memref<8x8x128xf32, #tpu.memory_space<vmem>>, vector<8x8x128xf32>
    %30 = vector.shape_cast %29 : vector<8x8x128xf32> to vector<64x128xf32>
    %cst_14 = arith.constant 1.000000e+00 : f32
    %31 = vector.broadcast %cst_14 : f32 to vector<64x128xf32>
    %32 = arith.subf %31, %25 : vector<64x128xf32>
    %33 = arith.mulf %30, %32 : vector<64x128xf32>
    %c0_15 = arith.constant 0 : index
    %c0_16 = arith.constant 0 : index
    %34 = vector.load %arg9[%c0_15, %c0_16] : memref<8x128xf32, #tpu.memory_space<vmem>>, vector<8x128xf32>
    %35 = vector.extract_strided_slice %17 {offsets = [0, 0], sizes = [8, 128], strides = [1, 1]} : vector<64x128xf32> to vector<8x128xf32>
    %36 = arith.mulf %34, %35 : vector<8x128xf32>
    %37 = vector.extract_strided_slice %28 {offsets = [0, 0], sizes = [8, 128], strides = [1, 1]} : vector<64x128xf32> to vector<8x128xf32>
    %38 = arith.addf %36, %37 : vector<8x128xf32>
    %39 = math.tanh %38 : vector<8x128xf32>
    %40 = vector.extract_strided_slice %25 {offsets = [0, 0], sizes = [8, 128], strides = [1, 1]} : vector<64x128xf32> to vector<8x128xf32>
    %41 = arith.mulf %39, %40 : vector<8x128xf32>
    %42 = vector.extract_strided_slice %33 {offsets = [0, 0], sizes = [8, 128], strides = [1, 1]} : vector<64x128xf32> to vector<8x128xf32>
    %43 = arith.addf %41, %42 : vector<8x128xf32>
    %c0_17 = arith.constant 0 : index
    %c0_18 = arith.constant 0 : index
    %c0_19 = arith.constant 0 : index
    %44 = vector.load %arg7[%c0_17, %c0_18, %c0_19] : memref<8x8x128xf32, #tpu.memory_space<vmem>>, vector<1x8x128xf32>
    %45 = vector.shape_cast %44 : vector<1x8x128xf32> to vector<8x128xf32>
    %46 = vector.shape_cast %43 : vector<8x128xf32> to vector<1x8x128xf32>
    tpu.vector_store %arg7[%c0_17, %c0_18, %c0_19], %46 {strides = array<i32>} : memref<8x8x128xf32, #tpu.memory_space<vmem>>, vector<1x8x128xf32>,
    %47 = vector.extract_strided_slice %17 {offsets = [8, 0], sizes = [8, 128], strides = [1, 1]} : vector<64x128xf32> to vector<8x128xf32>
    %48 = arith.mulf %38, %47 : vector<8x128xf32>
    %49 = vector.extract_strided_slice %28 {offsets = [8, 0], sizes = [8, 128], strides = [1, 1]} : vector<64x128xf32> to vector<8x128xf32>
    %50 = arith.addf %48, %49 : vector<8x128xf32>
    %51 = math.tanh %50 : vector<8x128xf32>
    %52 = vector.extract_strided_slice %25 {offsets = [8, 0], sizes = [8, 128], strides = [1, 1]} : vector<64x128xf32> to vector<8x128xf32>
    %53 = arith.mulf %51, %52 : vector<8x128xf32>
    %54 = vector.extract_strided_slice %33 {offsets = [8, 0], sizes = [8, 128], strides = [1, 1]} : vector<64x128xf32> to vector<8x128xf32>
    %55 = arith.addf %53, %54 : vector<8x128xf32>
    %c1_20 = arith.constant 1 : index
    %c0_21 = arith.constant 0 : index
    %c0_22 = arith.constant 0 : index
    %56 = vector.load %arg7[%c1_20, %c0_21, %c0_22] : memref<8x8x128xf32, #tpu.memory_space<vmem>>, vector<1x8x128xf32>
    %57 = vector.shape_cast %56 : vector<1x8x128xf32> to vector<8x128xf32>
    %58 = vector.shape_cast %55 : vector<8x128xf32> to vector<1x8x128xf32>
    tpu.vector_store %arg7[%c1_20, %c0_21, %c0_22], %58 {strides = array<i32>} : memref<8x8x128xf32, #tpu.memory_space<vmem>>, vector<1x8x128xf32>,
    %59 = vector.extract_strided_slice %17 {offsets = [16, 0], sizes = [8, 128], strides = [1, 1]} : vector<64x128xf32> to vector<8x128xf32>
    %60 = arith.mulf %50, %59 : vector<8x128xf32>
    %61 = vector.extract_strided_slice %28 {offsets = [16, 0], sizes = [8, 128], strides = [1, 1]} : vector<64x128xf32> to vector<8x128xf32>
    %62 = arith.addf %60, %61 : vector<8x128xf32>
    %63 = math.tanh %62 : vector<8x128xf32>
    %64 = vector.extract_strided_slice %25 {offsets = [16, 0], sizes = [8, 128], strides = [1, 1]} : vector<64x128xf32> to vector<8x128xf32>
    %65 = arith.mulf %63, %64 : vector<8x128xf32>
    %66 = vector.extract_strided_slice %33 {offsets = [16, 0], sizes = [8, 128], strides = [1, 1]} : vector<64x128xf32> to vector<8x128xf32>
    %67 = arith.addf %65, %66 : vector<8x128xf32>
    %c2 = arith.constant 2 : index
    %c0_23 = arith.constant 0 : index
    %c0_24 = arith.constant 0 : index
    %68 = vector.load %arg7[%c2, %c0_23, %c0_24] : memref<8x8x128xf32, #tpu.memory_space<vmem>>, vector<1x8x128xf32>
    %69 = vector.shape_cast %68 : vector<1x8x128xf32> to vector<8x128xf32>
    %70 = vector.shape_cast %67 : vector<8x128xf32> to vector<1x8x128xf32>
    tpu.vector_store %arg7[%c2, %c0_23, %c0_24], %70 {strides = array<i32>} : memref<8x8x128xf32, #tpu.memory_space<vmem>>, vector<1x8x128xf32>,
    %71 = vector.extract_strided_slice %17 {offsets = [24, 0], sizes = [8, 128], strides = [1, 1]} : vector<64x128xf32> to vector<8x128xf32>
    %72 = arith.mulf %62, %71 : vector<8x128xf32>
    %73 = vector.extract_strided_slice %28 {offsets = [24, 0], sizes = [8, 128], strides = [1, 1]} : vector<64x128xf32> to vector<8x128xf32>
    %74 = arith.addf %72, %73 : vector<8x128xf32>
    %75 = math.tanh %74 : vector<8x128xf32>
    %76 = vector.extract_strided_slice %25 {offsets = [24, 0], sizes = [8, 128], strides = [1, 1]} : vector<64x128xf32> to vector<8x128xf32>
    %77 = arith.mulf %75, %76 : vector<8x128xf32>
    %78 = vector.extract_strided_slice %33 {offsets = [24, 0], sizes = [8, 128], strides = [1, 1]} : vector<64x128xf32> to vector<8x128xf32>
    %79 = arith.addf %77, %78 : vector<8x128xf32>
    %c3 = arith.constant 3 : index
    %c0_25 = arith.constant 0 : index
    %c0_26 = arith.constant 0 : index
    %80 = vector.load %arg7[%c3, %c0_25, %c0_26] : memref<8x8x128xf32, #tpu.memory_space<vmem>>, vector<1x8x128xf32>
    %81 = vector.shape_cast %80 : vector<1x8x128xf32> to vector<8x128xf32>
    %82 = vector.shape_cast %79 : vector<8x128xf32> to vector<1x8x128xf32>
    tpu.vector_store %arg7[%c3, %c0_25, %c0_26], %82 {strides = array<i32>} : memref<8x8x128xf32, #tpu.memory_space<vmem>>, vector<1x8x128xf32>,
    %83 = vector.extract_strided_slice %17 {offsets = [32, 0], sizes = [8, 128], strides = [1, 1]} : vector<64x128xf32> to vector<8x128xf32>
    %84 = arith.mulf %74, %83 : vector<8x128xf32>
    %85 = vector.extract_strided_slice %28 {offsets = [32, 0], sizes = [8, 128], strides = [1, 1]} : vector<64x128xf32> to vector<8x128xf32>
    %86 = arith.addf %84, %85 : vector<8x128xf32>
    %87 = math.tanh %86 : vector<8x128xf32>
    %88 = vector.extract_strided_slice %25 {offsets = [32, 0], sizes = [8, 128], strides = [1, 1]} : vector<64x128xf32> to vector<8x128xf32>
    %89 = arith.mulf %87, %88 : vector<8x128xf32>
    %90 = vector.extract_strided_slice %33 {offsets = [32, 0], sizes = [8, 128], strides = [1, 1]} : vector<64x128xf32> to vector<8x128xf32>
    %91 = arith.addf %89, %90 : vector<8x128xf32>
    %c4 = arith.constant 4 : index
    %c0_27 = arith.constant 0 : index
    %c0_28 = arith.constant 0 : index
    %92 = vector.load %arg7[%c4, %c0_27, %c0_28] : memref<8x8x128xf32, #tpu.memory_space<vmem>>, vector<1x8x128xf32>
    %93 = vector.shape_cast %92 : vector<1x8x128xf32> to vector<8x128xf32>
    %94 = vector.shape_cast %91 : vector<8x128xf32> to vector<1x8x128xf32>
    tpu.vector_store %arg7[%c4, %c0_27, %c0_28], %94 {strides = array<i32>} : memref<8x8x128xf32, #tpu.memory_space<vmem>>, vector<1x8x128xf32>,
    %95 = vector.extract_strided_slice %17 {offsets = [40, 0], sizes = [8, 128], strides = [1, 1]} : vector<64x128xf32> to vector<8x128xf32>
    %96 = arith.mulf %86, %95 : vector<8x128xf32>
    %97 = vector.extract_strided_slice %28 {offsets = [40, 0], sizes = [8, 128], strides = [1, 1]} : vector<64x128xf32> to vector<8x128xf32>
    %98 = arith.addf %96, %97 : vector<8x128xf32>
    %99 = math.tanh %98 : vector<8x128xf32>
    %100 = vector.extract_strided_slice %25 {offsets = [40, 0], sizes = [8, 128], strides = [1, 1]} : vector<64x128xf32> to vector<8x128xf32>
    %101 = arith.mulf %99, %100 : vector<8x128xf32>
    %102 = vector.extract_strided_slice %33 {offsets = [40, 0], sizes = [8, 128], strides = [1, 1]} : vector<64x128xf32> to vector<8x128xf32>
    %103 = arith.addf %101, %102 : vector<8x128xf32>
    %c5 = arith.constant 5 : index
    %c0_29 = arith.constant 0 : index
    %c0_30 = arith.constant 0 : index
    %104 = vector.load %arg7[%c5, %c0_29, %c0_30] : memref<8x8x128xf32, #tpu.memory_space<vmem>>, vector<1x8x128xf32>
    %105 = vector.shape_cast %104 : vector<1x8x128xf32> to vector<8x128xf32>
    %106 = vector.shape_cast %103 : vector<8x128xf32> to vector<1x8x128xf32>
    tpu.vector_store %arg7[%c5, %c0_29, %c0_30], %106 {strides = array<i32>} : memref<8x8x128xf32, #tpu.memory_space<vmem>>, vector<1x8x128xf32>,
    %107 = vector.extract_strided_slice %17 {offsets = [48, 0], sizes = [8, 128], strides = [1, 1]} : vector<64x128xf32> to vector<8x128xf32>
    %108 = arith.mulf %98, %107 : vector<8x128xf32>
    %109 = vector.extract_strided_slice %28 {offsets = [48, 0], sizes = [8, 128], strides = [1, 1]} : vector<64x128xf32> to vector<8x128xf32>
    %110 = arith.addf %108, %109 : vector<8x128xf32>
    %111 = math.tanh %110 : vector<8x128xf32>
    %112 = vector.extract_strided_slice %25 {offsets = [48, 0], sizes = [8, 128], strides = [1, 1]} : vector<64x128xf32> to vector<8x128xf32>
    %113 = arith.mulf %111, %112 : vector<8x128xf32>
    %114 = vector.extract_strided_slice %33 {offsets = [48, 0], sizes = [8, 128], strides = [1, 1]} : vector<64x128xf32> to vector<8x128xf32>
    %115 = arith.addf %113, %114 : vector<8x128xf32>
    %c6 = arith.constant 6 : index
    %c0_31 = arith.constant 0 : index
    %c0_32 = arith.constant 0 : index
    %116 = vector.load %arg7[%c6, %c0_31, %c0_32] : memref<8x8x128xf32, #tpu.memory_space<vmem>>, vector<1x8x128xf32>
    %117 = vector.shape_cast %116 : vector<1x8x128xf32> to vector<8x128xf32>
    %118 = vector.shape_cast %115 : vector<8x128xf32> to vector<1x8x128xf32>
    tpu.vector_store %arg7[%c6, %c0_31, %c0_32], %118 {strides = array<i32>} : memref<8x8x128xf32, #tpu.memory_space<vmem>>, vector<1x8x128xf32>,
    %119 = vector.extract_strided_slice %17 {offsets = [56, 0], sizes = [8, 128], strides = [1, 1]} : vector<64x128xf32> to vector<8x128xf32>
    %120 = arith.mulf %110, %119 : vector<8x128xf32>
    %121 = vector.extract_strided_slice %28 {offsets = [56, 0], sizes = [8, 128], strides = [1, 1]} : vector<64x128xf32> to vector<8x128xf32>
    %122 = arith.addf %120, %121 : vector<8x128xf32>
    %123 = math.tanh %122 : vector<8x128xf32>
    %124 = vector.extract_strided_slice %25 {offsets = [56, 0], sizes = [8, 128], strides = [1, 1]} : vector<64x128xf32> to vector<8x128xf32>
    %125 = arith.mulf %123, %124 : vector<8x128xf32>
    %126 = vector.extract_strided_slice %33 {offsets = [56, 0], sizes = [8, 128], strides = [1, 1]} : vector<64x128xf32> to vector<8x128xf32>
    %127 = arith.addf %125, %126 : vector<8x128xf32>
    %c7 = arith.constant 7 : index
    %c0_33 = arith.constant 0 : index
    %c0_34 = arith.constant 0 : index
    %128 = vector.load %arg7[%c7, %c0_33, %c0_34] : memref<8x8x128xf32, #tpu.memory_space<vmem>>, vector<1x8x128xf32>
    %129 = vector.shape_cast %128 : vector<1x8x128xf32> to vector<8x128xf32>
    %130 = vector.shape_cast %127 : vector<8x128xf32> to vector<1x8x128xf32>
    tpu.vector_store %arg7[%c7, %c0_33, %c0_34], %130 {strides = array<i32>} : memref<8x8x128xf32, #tpu.memory_space<vmem>>, vector<1x8x128xf32>,
    %c0_i32_35 = arith.constant 0 : i32
    %131 = arith.cmpi eq, %arg1, %c0_i32_35 : i32
    %132 = arith.extui %131 : i1 to i32
    %c0_i32_36 = arith.constant 0 : i32
    %133 = arith.cmpi ne, %132, %c0_i32_36 : i32
    scf.if %133 {
      %c0_39 = arith.constant 0 : index
      %c0_40 = arith.constant 0 : index
      %135 = vector.load %arg8[%c0_39, %c0_40] : memref<8x128xf32, #tpu.memory_space<vmem>>, vector<8x128xf32>
      tpu.vector_store %arg8[%c0_39, %c0_40], %122 {strides = array<i32>} : memref<8x128xf32, #tpu.memory_space<vmem>>, vector<8x128xf32>,
    } else {
    }
    %c0_37 = arith.constant 0 : index
    %c0_38 = arith.constant 0 : index
    %134 = vector.load %arg9[%c0_37, %c0_38] : memref<8x128xf32, #tpu.memory_space<vmem>>, vector<8x128xf32>
    tpu.vector_store %arg9[%c0_37, %c0_38], %122 {strides = array<i32>} : memref<8x128xf32, #tpu.memory_space<vmem>>, vector<8x128xf32>,
    return
  }
  func.func @transform_0(%arg0: i32, %arg1: i32) -> (i32, i32, i32) {
    %c0_i32 = arith.constant 0 : i32
    %c0_i32_0 = arith.constant 0 : i32
    %c0_i32_1 = arith.constant 0 : i32
    return %arg1, %c0_i32, %c0_i32_0 : i32, i32, i32
  }
  func.func @transform_1(%arg0: i32, %arg1: i32) -> (i32, i32, i32) {
    %c0_i32 = arith.constant 0 : i32
    %c0_i32_0 = arith.constant 0 : i32
    return %arg1, %c0_i32, %arg0 : i32, i32, i32
  }
  func.func @transform_2(%arg0: i32, %arg1: i32) -> (i32, i32) {
    %c0_i32 = arith.constant 0 : i32
    %c0_i32_0 = arith.constant 0 : i32
    return %c0_i32, %arg0 : i32, i32
  }
  func.func @transform_3(%arg0: i32, %arg1: i32) -> (i32, i32) {
    %c0_i32 = arith.constant 0 : i32
    %c0_i32_0 = arith.constant 0 : i32
    return %c0_i32, %arg0 : i32, i32
  }
  func.func @transform_4(%arg0: i32, %arg1: i32) -> (i32, i32) {
    %c0_i32 = arith.constant 0 : i32
    %c0_i32_0 = arith.constant 0 : i32
    return %c0_i32, %arg0 : i32, i32
  }
  func.func @transform_5(%arg0: i32, %arg1: i32) -> (i32, i32, i32) {
    %c0_i32 = arith.constant 0 : i32
    %c0_i32_0 = arith.constant 0 : i32
    return %arg1, %c0_i32, %arg0 : i32, i32, i32
  }
  func.func @transform_6(%arg0: i32, %arg1: i32) -> (i32, i32) {
    %c0_i32 = arith.constant 0 : i32
    %c0_i32_0 = arith.constant 0 : i32
    return %c0_i32, %arg0 : i32, i32
  }
}

</mosaic_0001>

<bundles_post_ra>
// kernel: tpu_custom_call.1
= control target key start
LH: loop header
LB: loop body
LE: loop exit
PB: predicated region body
PF: predicated region fallthrough
CT: control target
= control target key end

     0   :  { %12 = vsyncpa [#allocation4], 0  ;;  %s1144_s0 = inlined_call_operand.hbm [shape: f32[8,8,128], index: 0, kind: input, shape index: {}]   ;;  %s1145_s1 = inlined_call_operand.hbm [shape: f32[8,8,128], index: 1, kind: input, shape index: {}]   ;;  %s1146_s2 = inlined_call_operand.hbm [shape: f32[128,384], index: 2, kind: input, shape index: {}]   ;;  %s1147_s3 = inlined_call_operand.vmem [shape: f32[2,128], index: 3, kind: input, shape index: {}]   ;;  %s1148_s4 = inlined_call_operand.vmem [shape: f32[8,128], index: 4, kind: input, shape index: {}]   ;;  %s1149_s5 = inlined_call_operand.hbm [shape: f32[8,8,128], index: 5, kind: output, shape index: {0}]   ;;  %s1150_s6 = inlined_call_operand.hbm [shape: f32[8,128], index: 6, kind: output, shape index: {1}]  }
   0x1   :  { %13 = vsyncpa [#allocation7], 0 }
   0x2   :  { %14 = vsyncpa [#allocation5], 0 }
   0x3   :  { %15 = vsyncpa [#allocation11], 0  ;;  %s958_s21 = smov [#allocation6]   ;;  %s959_s23 = smov [#allocation3]  }
   0x4   :  { %s33_s22 = sshll.u32 %s958_s21, 4  ;;  %s21_s24 = sshll.u32 %s959_s23, 4  ;;  %s34_s22 = int_to_ptr.vmem [resolvable:$true] %s33_s22  ;;  %s1003_s24 = int_to_ptr.vmem [resolvable:$true] %s21_s24 }
   0x5   :  { %s840_s27 = scalar_lea.hbm %s1145_s1, 1024 }
   0x6   :  { %p841_p0 = scmp.ne.s32.totalorder %s1145_s1, %s840_s27  ;;  %p844_p1 = scmp.lt.u32.totalorder %s840_s27, %s1145_s1 }
   0x8   :  { %p846_p2 = pnand %p844_p1, %p841_p0 }
   0xa   :  { %849 = shalt.err (!%p846_p2)
}
   0xb   :  { %s850_s8 = scalar_lea.vmem %s34_s22, 1024  ;;  %p855_p4 = scmp.lt.s32.totalorder %s34_s22, %s34_s22 }
   0xc   :  { %p851_p3 = scmp.ne.s32.totalorder %s34_s22, %s850_s8  ;;  %p856_p5 = scmp.lt.s32.totalorder %s850_s8, %s850_s8 }
   0xe   :  { %p857_p6 = por %p856_p5, %p855_p4 }
  0x10   :  { %p858_p7 = pnand %p857_p6, %p851_p3 }
  0x12   :  { %861 = shalt.err (!%p858_p7)
}
  0x13   :  { %s960_s9 = smov 128   ;;  %s961_s10 = smov 8  }
  0x14   :  { %39 = dma.hbm_to_vmem [thread:$0]  %s1145_s1, 1024, %s34_s22, [#allocation7], %s960_s9, %s960_s9, %s961_s10  }
  0x15   :  { %s862_s15 = scalar_lea.hbm %s1144_s0, 1024 }
  0x16   :  { %p863_p8 = scmp.ne.s32.totalorder %s1144_s0, %s862_s15  ;;  %p866_p9 = scmp.lt.u32.totalorder %s862_s15, %s1144_s0 }
  0x18   :  { %p868_p10 = pnand %p866_p9, %p863_p8 }
  0x1a   :  { %871 = shalt.err (!%p868_p10)
}
  0x1b   :  { %s872_s20 = scalar_lea.vmem %s1003_s24, 1024  ;;  %p877_p12 = scmp.lt.s32.totalorder %s1003_s24, %s1003_s24 }
  0x1c   :  { %p873_p11 = scmp.ne.s32.totalorder %s1003_s24, %s872_s20  ;;  %p878_p13 = scmp.lt.s32.totalorder %s872_s20, %s872_s20 }
  0x1e   :  { %p879_p0 = por %p878_p13, %p877_p12 }
  0x20   :  { %p880_p1 = pnand %p879_p0, %p873_p11 }
  0x22   :  { %883 = shalt.err (!%p880_p1)
}
  0x23   :  { %27 = dma.hbm_to_vmem [thread:$0]  %s1144_s0, 1024, %s1003_s24, [#allocation4], %s960_s9, %s960_s9, %s961_s10  }
  0x24   :  { %s962_s22 = smov [#allocation8]   ;;  %s884_s27 = scalar_lea.hbm %s1146_s2, 6144 }
  0x25   :  { %s45_s23 = sshll.u32 %s962_s22, 4  ;;  %p885_p2 = scmp.ne.s32.totalorder %s1146_s2, %s884_s27  ;;  %s46_s23 = int_to_ptr.vmem [resolvable:$true] %s45_s23 }
  0x26   :  { %p888_p3 = scmp.lt.u32.totalorder %s884_s27, %s1146_s2 }
  0x28   :  { %p890_p4 = pnand %p888_p3, %p885_p2 }
  0x2a   :  { %893 = shalt.err (!%p890_p4)
}
  0x2b   :  { %s894_s8 = scalar_lea.vmem %s46_s23, 6144  ;;  %p899_p6 = scmp.lt.s32.totalorder %s46_s23, %s46_s23 }
  0x2c   :  { %p895_p5 = scmp.ne.s32.totalorder %s46_s23, %s894_s8  ;;  %p900_p7 = scmp.lt.s32.totalorder %s894_s8, %s894_s8 }
  0x2e   :  { %p901_p8 = por %p900_p7, %p899_p6 }
  0x30   :  { %p902_p9 = pnand %p901_p8, %p895_p5 }
  0x32   :  { %905 = shalt.err (!%p902_p9)
}
  0x33   :  { %s963_s0 = smov 384   ;;  %s964_s24 = smov 24  }
  0x34   :  { %51 = dma.hbm_to_vmem [thread:$0]  %s1146_s2, 6144, %s46_s23, [#allocation7], %s963_s0, %s963_s0, %s964_s24  }
  0x35   :  { %950 = dma.done.wait [#allocation4], 1024  }
  0x36   :  { %951 = vsyncadd [#allocation4], 4294966272 }
  0x37   :  { %952 = dma.done.wait [#allocation7], 7168  }
  0x38   :  { %953 = vsyncadd [#allocation7], 4294960128  ;;  %v965_v0 = vmov 0.0   ;;  %v80_v1 = vld [vmem:[#allocation8 + $0x8] sm:$0xff]  ;;  %v83_v2 = vld [vmem:[#allocation8 + $0x20] sm:$0xff] }
  0x39   :  { %191 = vmatprep.mubr.f32.mxu0 %v965_v0  ;;  %v79_v3 = vld [vmem:[#allocation8] sm:$0xff]  ;;  %v686_v4 = vpack.c.bf16 %v83_v2, %v80_v1  ;;  %v82_v5 = vld [vmem:[#allocation8 + $0x18] sm:$0xff]  ;;  %v89_v7 = vld [vmem:[#allocation8 + $0x50] sm:$0xff] }
  0x3a   :  { %v86_v6 = vld [vmem:[#allocation8 + $0x38] sm:$0xff]  ;;  %v688_v8 = vpack.c.bf16 %v82_v5, %v79_v3  ;;  %v85_v10 = vld [vmem:[#allocation8 + $0x30] sm:$0xff]  ;;  %v88_v11 = vld [vmem:[#allocation8 + $0x48] sm:$0xff] }
  0x3b   :  { %v690_v9 = vpack.c.bf16 %v89_v7, %v86_v6  ;;  %v92_v12 = vld [vmem:[#allocation8 + $0x68] sm:$0xff]  ;;  %687 = vmatprep.subr.bf16.mxu0 %v686_v4  ;;  %v95_v13 = vld [vmem:[#allocation8 + $0x80] sm:$0xff]  ;;  %v692_v14 = vpack.c.bf16 %v88_v11, %v85_v10  ;;  %v94_v17 = vld [vmem:[#allocation8 + $0x78] sm:$0xff] }
  0x3c   :  { %689 = vmatpush1.bf16.msra.mxu0 %v688_v8  ;;  %v91_v15 = vld [vmem:[#allocation8 + $0x60] sm:$0xff]  ;;  %v694_v16 = vpack.c.bf16 %v95_v13, %v92_v12  ;;  %v81_v18 = vld [vmem:[#allocation8 + $0x10] sm:$0xff]  ;;  %v84_v19 = vld [vmem:[#allocation8 + $0x28] sm:$0xff] }
  0x3d   :  { %691 = vmatprep.subr.bf16.mxu0 %v690_v9  ;;  %v98_v20 = vld [vmem:[#allocation8 + $0x98] sm:$0xff]  ;;  %v101_v21 = vld [vmem:[#allocation8 + $0xb0] sm:$0xff]  ;;  %v718_v22 = vpack.c.bf16 %v84_v19, %v81_v18  ;;  %v87_v23 = vld [vmem:[#allocation8 + $0x40] sm:$0xff]  ;;  %v696_v25 = vpack.c.bf16 %v94_v17, %v91_v15 }
  0x3e   :  { %v90_v24 = vld [vmem:[#allocation8 + $0x58] sm:$0xff]  ;;  %v97_v26 = vld [vmem:[#allocation8 + $0x90] sm:$0xff]  ;;  %v698_v28 = vpack.c.bf16 %v101_v21, %v98_v20  ;;  %v100_v29 = vld [vmem:[#allocation8 + $0xa8] sm:$0xff] }
  0x3f   :  { %719 = vmatprep.subr.bf16.mxu1 %v718_v22  ;;  %v722_v27 = vpack.c.bf16 %v90_v24, %v87_v23  ;;  %v93_v30 = vld [vmem:[#allocation8 + $0x70] sm:$0xff]  ;;  %v96_v31 = vld [vmem:[#allocation8 + $0x88] sm:$0xff]  ;;  %v107_v33 = vld [vmem:[#allocation8 + $0xe0] sm:$0xff]  ;;  %v700_v37 = vpack.c.bf16 %v100_v29, %v97_v26 }
  0x40   :  { %693 = vmatpush1.bf16.msra.mxu0 %v692_v14  ;;  %721 = vmatpush3.bf16.msra.mxu1 %v718_v22  ;;  %v104_v32 = vld [vmem:[#allocation8 + $0xc8] sm:$0xff]  ;;  %v726_v34 = vpack.c.bf16 %v96_v31, %v93_v30  ;;  %v99_v35 = vld [vmem:[#allocation8 + $0xa0] sm:$0xff]  ;;  %v102_v36 = vld [vmem:[#allocation8 + $0xb8] sm:$0xff] }
  0x41   :  { %695 = vmatprep.subr.bf16.mxu0 %v694_v16  ;;  %723 = vmatprep.subr.bf16.mxu1 %v722_v27  ;;  %v702_v38 = vpack.c.bf16 %v107_v33, %v104_v32  ;;  %v103_v39 = vld [vmem:[#allocation8 + $0xc0] sm:$0xff]  ;;  %v106_v40 = vld [vmem:[#allocation8 + $0xd8] sm:$0xff]  ;;  %v113_v42 = vld [vmem:[#allocation8 + $0x110] sm:$0xff]  ;;  %v730_v43 = vpack.c.bf16 %v102_v36, %v99_v35 }
  0x42   :  { %v110_v41 = vld [vmem:[#allocation8 + $0xf8] sm:$0xff]  ;;  %v71_v44 = vld [vmem:[#allocation3] sm:$0xff]  ;;  %v105_v45 = vld [vmem:[#allocation8 + $0xd0] sm:$0xff]  ;;  %v704_v47 = vpack.c.bf16 %v106_v40, %v103_v39 }
  0x43   :  { %v108_v46 = vld [vmem:[#allocation8 + $0xe8] sm:$0xff]  ;;  %674 = vmatprep.mubr.f32.mxu1 %v71_v44  ;;  %v706_v48 = vpack.c.bf16 %v113_v42, %v110_v41  ;;  %v109_v49 = vld [vmem:[#allocation8 + $0xf0] sm:$0xff]  ;;  %v119_v52 = vld [vmem:[#allocation8 + $0x140] sm:$0xff] }
  0x44   :  { %697 = vmatpush1.bf16.msra.mxu0 %v696_v25  ;;  %725 = vmatpush3.bf16.msra.mxu1 %v722_v27  ;;  %v112_v50 = vld [vmem:[#allocation8 + $0x108] sm:$0xff]  ;;  %v734_v53 = vpack.c.bf16 %v108_v46, %v105_v45  ;;  %v111_v54 = vld [vmem:[#allocation8 + $0x100] sm:$0xff]  ;;  %v114_v55 = vld [vmem:[#allocation8 + $0x118] sm:$0xff] }
  0x45   :  { %699 = vmatprep.subr.bf16.mxu0 %v698_v28  ;;  %727 = vmatprep.subr.bf16.mxu1 %v726_v34  ;;  %v116_v51 = vld [vmem:[#allocation8 + $0x128] sm:$0xff]  ;;  %v708_v56 = vpack.c.bf16 %v112_v50, %v109_v49  ;;  %v115_v58 = vld [vmem:[#allocation8 + $0x120] sm:$0xff]  ;;  %v118_v59 = vld [vmem:[#allocation8 + $0x138] sm:$0xff]  ;;  %v738_v62 = vpack.c.bf16 %v114_v55, %v111_v54 }
  0x46   :  { %v710_v57 = vpack.c.bf16 %v119_v52, %v116_v51  ;;  %v122_v60 = vld [vmem:[#allocation8 + $0x158] sm:$0xff]  ;;  %v125_v61 = vld [vmem:[#allocation8 + $0x170] sm:$0xff]  ;;  %v120_v1 = vld [vmem:[#allocation8 + $0x148] sm:$0xff]  ;;  %v712_v2 = vpack.c.bf16 %v118_v59, %v115_v58 }
  0x47   :  { %v117_v63 = vld [vmem:[#allocation8 + $0x130] sm:$0xff]  ;;  %v714_v3 = vpack.c.bf16 %v125_v61, %v122_v60  ;;  %v124_v5 = vld [vmem:[#allocation8 + $0x168] sm:$0xff]  ;;  %v123_v7 = vld [vmem:[#allocation8 + $0x160] sm:$0xff] }
  0x48   :  { %701 = vmatpush1.bf16.msra.mxu0 %v700_v37  ;;  %729 = vmatpush3.bf16.msra.mxu1 %v726_v34  ;;  %v121_v4 = vld [vmem:[#allocation8 + $0x150] sm:$0xff]  ;;  %v742_v6 = vpack.c.bf16 %v120_v1, %v117_v63  ;;  %v126_v8 = vld [vmem:[#allocation8 + $0x178] sm:$0xff]  ;;  %v72_v11 = vld [vmem:[#allocation3 + $0x8] sm:$0xff] }
  0x49   :  { %703 = vmatprep.subr.bf16.mxu0 %v702_v38  ;;  %731 = vmatprep.subr.bf16.mxu1 %v730_v43  ;;  %v716_v9 = vpack.c.bf16 %v124_v5, %v121_v4  ;;  %v746_v10 = vpack.c.bf16 %v126_v8, %v123_v7  ;;  %v73_v12 = vld [vmem:[#allocation3 + $0x10] sm:$0xff]  ;;  %v74_v13 = vld [vmem:[#allocation3 + $0x18] sm:$0xff]  ;;  %v75_v14 = vld [vmem:[#allocation3 + $0x20] sm:$0xff] }
  0x4a   :  { %v76_v15 = vld [vmem:[#allocation3 + $0x28] sm:$0xff]  ;;  %v77_v16 = vld [vmem:[#allocation3 + $0x30] sm:$0xff]  ;;  %v78_v17 = vld [vmem:[#allocation3 + $0x38] sm:$0xff] }
  0x4b   :  { %v1063_v18 = vld [vmem:[%s1147_s3] ss:$0 sm:$0xff]  ;;  %v1073_v24 = vld [vmem:[%s1147_s3 + $0x1] ss:$0 sm:$0xff] }
  0x4c   :  { %705 = vmatpush1.bf16.msra.mxu0 %v704_v47  ;;  %733 = vmatpush3.bf16.msra.mxu1 %v730_v43 }
  0x4d   :  { %707 = vmatprep.subr.bf16.mxu0 %v706_v48  ;;  %735 = vmatprep.subr.bf16.mxu1 %v734_v53 }
  0x50   :  { %709 = vmatpush1.bf16.msra.mxu0 %v708_v56  ;;  %737 = vmatpush3.bf16.msra.mxu1 %v734_v53 }
  0x51   :  { %711 = vmatprep.subr.bf16.mxu0 %v710_v57  ;;  %739 = vmatprep.subr.bf16.mxu1 %v738_v62 }
  0x54   :  { %713 = vmatpush1.bf16.msra.mxu0 %v712_v2  ;;  %741 = vmatpush3.bf16.msra.mxu1 %v738_v62 }
  0x55   :  { %715 = vmatprep.subr.bf16.mxu0 %v714_v3  ;;  %743 = vmatprep.subr.bf16.mxu1 %v742_v6 }
  0x58   :  { %717 = vmatpush1.bf16.msra.mxu0 %v716_v9  ;;  %745 = vmatpush3.bf16.msra.mxu1 %v742_v6 }
  0x59   :  { %747 = vmatprep.subr.bf16.mxu1 %v746_v10 }
  0x5b   :  { %192 = vmatmul.mubr.f32.vlgmr.msra.gmra.mrb[0].mxu0 %v71_v44 }
  0x5c   :  { %197 = vmatprep.mubr.f32.mxu0 %v965_v0  ;;  %749 = vmatpush3.bf16.msra.mxu1 %v746_v10 }
  0x5f   :  { %198 = vmatmul.mubr.f32.gmra.mrb[2].mxu0 %v72_v11  ;;  %675 = vmatmul.mubr.f32.vlgmr.msra.gmra.mrb[0].mxu1 %v72_v11 }
  0x60   :  { %203 = vmatprep.mubr.f32.mxu0 %v965_v0  ;;  %677 = vmatprep.mubr.f32.mxu1 %v73_v12 }
  0x63   :  { %204 = vmatmul.mubr.f32.gmra.mrb[4].mxu0 %v73_v12  ;;  %678 = vmatmul.mubr.f32.gmra.mrb[2].mxu1 %v74_v13 }
  0x64   :  { %209 = vmatprep.mubr.f32.mxu0 %v965_v0  ;;  %680 = vmatprep.mubr.f32.mxu1 %v75_v14 }
  0x67   :  { %210 = vmatmul.mubr.f32.gmra.mrb[6].mxu0 %v74_v13  ;;  %681 = vmatmul.mubr.f32.gmra.mrb[4].mxu1 %v76_v15 }
  0x68   :  { %215 = vmatprep.mubr.f32.mxu0 %v965_v0  ;;  %683 = vmatprep.mubr.f32.mxu1 %v77_v16 }
  0x6b   :  { %216 = vmatmul.mubr.f32.gmra.mrb[8].mxu0 %v75_v14  ;;  %684 = vmatmul.mubr.f32.gmra.mrb[6].mxu1 %v78_v17 }
  0x6c   :  { %221 = vmatprep.mubr.f32.mxu0 %v965_v0 }
  0x6f   :  { %222 = vmatmul.mubr.f32.gmra.mrb[10].mxu0 %v76_v15 }
  0x70   :  { %227 = vmatprep.mubr.f32.mxu0 %v965_v0 }
  0x73   :  { %228 = vmatmul.mubr.f32.gmra.mrb[12].mxu0 %v77_v16 }
  0x74   :  { %233 = vmatprep.mubr.f32.mxu0 %v965_v0 }
  0x77   :  { %234 = vmatmul.mubr.f32.gmra.mrb[14].mxu0 %v78_v17 }
 0x12e   :  { %v1065_v19 = vpop.f32.mrb[0].mxu0 }
 0x12f   :  { %v195_v20 = vpop.f32.mrb[1].mxu0 }
 0x130   :  { %v350_v21 = vadd.f32 %v1063_v18, %v195_v20 }
 0x132   :  { %v601_v22 = vmul.f32 -1.442695, %v350_v21  ;;  %v1068_v23 = vpop.f32.mrb[2].mxu0  ;;  %v676_v25 = vpop.f32.mrb[0].mxu1 }
 0x133   :  { %v201_v0 = vpop.f32.mrb[3].mxu0  ;;  %v412_v27 = vadd.f32 %v676_v25, %v1073_v24  ;;  %v306_v28 = vpop.f32.mrb[1].mxu1 }
 0x134   :  { %760 = vpow2.f32 %v601_v22  ;;  %v351_v26 = vadd.f32 %v1063_v18, %v201_v0  ;;  %v411_v29 = vadd.f32 %v1073_v24, %v306_v28  ;;  %v69_v22 = vld [vmem:[%s1148_s4] sm:$0xff]  ;;  %s966_s4 = smov [#allocation10]  }
 0x135   :  { %v611_v32 = vmul.f32 -1.442695, %v412_v27  ;;  %s586_s17 = sshll.u32 %s966_s4, 4  ;;  %s587_s17 = int_to_ptr.vmem [resolvable:$true] %s586_s17 }
 0x136   :  { %v602_v30 = vmul.f32 -1.442695, %v351_v26  ;;  %v1078_v31 = vpop.f32.mrb[4].mxu0  ;;  %v610_v34 = vmul.f32 -1.442695, %v411_v29  ;;  %v679_v35 = vpop.f32.mrb[2].mxu1  ;;  %p911_p11 = scmp.lt.s32.totalorder %s587_s17, %s587_s17 }
 0x137   :  { %v207_v33 = vpop.f32.mrb[5].mxu0  ;;  %v414_v37 = vadd.f32 %v679_v35, %v1073_v24  ;;  %v316_v38 = vpop.f32.mrb[3].mxu1  ;;  %s906_s18 = scalar_lea.vmem %s587_s17, 128 }
 0x138   :  { %762 = vpow2.f32 %v602_v30  ;;  %v352_v36 = vadd.f32 %v1063_v18, %v207_v33  ;;  %v413_v39 = vadd.f32 %v1073_v24, %v316_v38  ;;  %p907_p10 = scmp.ne.s32.totalorder %s587_s17, %s906_s18  ;;  %p912_p12 = scmp.lt.s32.totalorder %s906_s18, %s906_s18 }
 0x139   :  { %764 = vpow2.f32 %v611_v32  ;;  %v613_v42 = vmul.f32 -1.442695, %v414_v37 }
 0x13a   :  { %v603_v40 = vmul.f32 -1.442695, %v352_v36  ;;  %v1083_v41 = vpop.f32.mrb[6].mxu0  ;;  %766 = vpow2.f32 %v610_v34  ;;  %v612_v44 = vmul.f32 -1.442695, %v413_v39  ;;  %v682_v45 = vpop.f32.mrb[4].mxu1  ;;  %p913_p13 = por %p912_p12, %p911_p11 }
 0x13b   :  { %v213_v43 = vpop.f32.mrb[7].mxu0  ;;  %v326_v47 = vpop.f32.mrb[5].mxu1  ;;  %v416_v51 = vadd.f32 %v682_v45, %v1073_v24 }
 0x13c   :  { %768 = vpow2.f32 %v603_v40  ;;  %v353_v46 = vadd.f32 %v1063_v18, %v213_v43  ;;  %v415_v54 = vadd.f32 %v1073_v24, %v326_v47  ;;  %p914_p0 = pnand %p913_p13, %p907_p10 }
 0x13d   :  { %770 = vpow2.f32 %v613_v42  ;;  %v615_v61 = vmul.f32 -1.442695, %v416_v51 }
 0x13e   :  { %v761_v48 = vpop.eup %760  ;;  %v604_v49 = vmul.f32 -1.442695, %v353_v46  ;;  %v1086_v50 = vpop.f32.mrb[8].mxu0  ;;  %772 = vpow2.f32 %v612_v44  ;;  %v614_v2 = vmul.f32 -1.442695, %v415_v54 }
 0x13f   :  { %v382_v52 = vadd.f32 1.0, %v761_v48  ;;  %v219_v53 = vpop.f32.mrb[9].mxu0  ;;  %v685_v55 = vpop.f32.mrb[6].mxu1 }
 0x140   :  { %774 = vpow2.f32 %v604_v49  ;;  %v354_v56 = vadd.f32 %v1063_v18, %v219_v53  ;;  %v336_v57 = vpop.f32.mrb[7].mxu1  ;;  %v418_v27 = vadd.f32 %v685_v55, %v1073_v24 }
 0x141   :  { %776 = vrcp.f32 %v382_v52  ;;  %v417_v30 = vadd.f32 %v1073_v24, %v336_v57 }
 0x142   :  { %v763_v58 = vpop.eup %762  ;;  %v605_v59 = vmul.f32 -1.442695, %v354_v56  ;;  %v1091_v60 = vpop.f32.mrb[10].mxu0  ;;  %v617_v38 = vmul.f32 -1.442695, %v418_v27 }
 0x143   :  { %v765_v62 = vpop.eup %764  ;;  %v383_v63 = vadd.f32 1.0, %v763_v58  ;;  %v225_v1 = vpop.f32.mrb[11].mxu0  ;;  %v616_v43 = vmul.f32 -1.442695, %v417_v30 }
 0x144   :  { %v767_v3 = vpop.eup %766  ;;  %778 = vpow2.f32 %v605_v59  ;;  %v355_v4 = vadd.f32 %v1063_v18, %v225_v1  ;;  %v444_v11 = vadd.f32 1.0, %v765_v62  ;;  %v483_v62 = vld [vmem:[#allocation6] sm:$0xff] }
 0x145   :  { %780 = vrcp.f32 %v383_v63  ;;  %v443_v6 = vadd.f32 1.0, %v767_v3 }
 0x146   :  { %v769_v5 = vpop.eup %768  ;;  %v606_v7 = vmul.f32 -1.442695, %v355_v4  ;;  %v1094_v8 = vpop.f32.mrb[12].mxu0  ;;  %782 = vpow2.f32 %v615_v61 }
 0x147   :  { %v771_v9 = vpop.eup %770  ;;  %v384_v10 = vadd.f32 1.0, %v769_v5  ;;  %v231_v12 = vpop.f32.mrb[13].mxu0  ;;  %784 = vpow2.f32 %v614_v2 }
 0x148   :  { %v773_v13 = vpop.eup %772  ;;  %786 = vpow2.f32 %v606_v7  ;;  %v356_v14 = vadd.f32 %v1063_v18, %v231_v12  ;;  %v446_v16 = vadd.f32 1.0, %v771_v9 }
 0x149   :  { %788 = vrcp.f32 %v384_v10  ;;  %v445_v25 = vadd.f32 1.0, %v773_v13  ;;  %v484_v10 = vld [vmem:[#allocation6 + $0x8] sm:$0xff] }
 0x14a   :  { %v775_v15 = vpop.eup %774  ;;  %790 = vrcp.f32 %v443_v6  ;;  %v607_v17 = vmul.f32 -1.442695, %v356_v14  ;;  %v1097_v20 = vpop.f32.mrb[14].mxu0 }
 0x14b   :  { %v777_v21 = vpop.eup %776  ;;  %v385_v0 = vadd.f32 1.0, %v775_v15  ;;  %792 = vrcp.f32 %v444_v11  ;;  %v237_v26 = vpop.f32.mrb[15].mxu0 }
 0x14c   :  { %v467_v28 = vsub.f32 1.0, %v777_v21  ;;  %794 = vpow2.f32 %v607_v17  ;;  %v357_v29 = vadd.f32 %v1063_v18, %v237_v26  ;;  %v508_v34 = vmul.f32 %v777_v21, %v69_v22 }
 0x14d   :  { %796 = vrcp.f32 %v385_v0 }
 0x14e   :  { %v779_v32 = vpop.eup %778  ;;  %v475_v33 = vmul.f32 %v467_v28, %v1065_v19  ;;  %798 = vrcp.f32 %v446_v16  ;;  %v608_v35 = vmul.f32 -1.442695, %v357_v29  ;;  %v485_v29 = vld [vmem:[#allocation6 + $0x10] sm:$0xff] }
 0x14f   :  { %v781_v36 = vpop.eup %780  ;;  %v386_v37 = vadd.f32 1.0, %v779_v32  ;;  %800 = vrcp.f32 %v445_v25 }
 0x150   :  { %v783_v39 = vpop.eup %782  ;;  %v468_v40 = vsub.f32 1.0, %v781_v36  ;;  %v509_v42 = vadd.f32 %v508_v34, %v475_v33  ;;  %802 = vpow2.f32 %v608_v35 }
 0x151   :  { %v785_v44 = vpop.eup %784  ;;  %804 = vrcp.f32 %v386_v37  ;;  %v448_v63 = vadd.f32 1.0, %v783_v39 }
 0x152   :  { %v787_v18 = vpop.eup %786  ;;  %v476_v24 = vmul.f32 %v468_v40, %v1068_v23  ;;  %806 = vtanh.f32 %v509_v42  ;;  %v514_v45 = vmul.f32 %v781_v36, %v509_v42  ;;  %v447_v51 = vadd.f32 1.0, %v785_v44  ;;  %v486_v40 = vld [vmem:[#allocation6 + $0x18] sm:$0xff] }
 0x153   :  { %v789_v19 = vpop.eup %788  ;;  %v387_v46 = vadd.f32 1.0, %v787_v18  ;;  %808 = vpow2.f32 %v617_v38 }
 0x154   :  { %v791_v47 = vpop.eup %790  ;;  %v469_v48 = vsub.f32 1.0, %v789_v19  ;;  %v515_v49 = vadd.f32 %v514_v45, %v476_v24  ;;  %810 = vpow2.f32 %v616_v43 }
 0x155   :  { %v793_v52 = vpop.eup %792  ;;  %812 = vrcp.f32 %v387_v46  ;;  %v491_v57 = vsub.f32 1.0, %v791_v47 }
 0x156   :  { %v795_v53 = vpop.eup %794  ;;  %v477_v54 = vmul.f32 %v469_v48, %v1078_v31  ;;  %814 = vtanh.f32 %v515_v49  ;;  %v521_v55 = vmul.f32 %v789_v19, %v515_v49  ;;  %v492_v5 = vsub.f32 1.0, %v793_v52 }
 0x157   :  { %v797_v56 = vpop.eup %796  ;;  %v388_v23 = vadd.f32 1.0, %v795_v53  ;;  %816 = vrcp.f32 %v447_v51  ;;  %v499_v6 = vmul.f32 %v491_v57, %v483_v62  ;;  %v488_v62 = vld [vmem:[#allocation6 + $0x28] sm:$0xff] }
 0x158   :  { %v1108_v58 = vpop.eup %798  ;;  %v470_v59 = vsub.f32 1.0, %v797_v56  ;;  %v522_v61 = vadd.f32 %v521_v55, %v477_v54  ;;  %v500_v21 = vmul.f32 %v492_v5, %v484_v10 }
 0x159   :  { %v801_v1 = vpop.eup %800  ;;  %818 = vrcp.f32 %v388_v23  ;;  %v494_v37 = vsub.f32 1.0, %v1108_v58 }
 0x15a   :  { %v803_v2 = vpop.eup %802  ;;  %v478_v3 = vmul.f32 %v470_v59, %v1083_v41  ;;  %820 = vtanh.f32 %v522_v61  ;;  %v528_v4 = vmul.f32 %v797_v56, %v522_v61  ;;  %v493_v0 = vsub.f32 1.0, %v801_v1 }
 0x15b   :  { %v805_v31 = vpop.eup %804  ;;  %v389_v7 = vadd.f32 1.0, %v803_v2  ;;  %822 = vrcp.f32 %v448_v63  ;;  %v502_v19 = vmul.f32 %v494_v37, %v486_v40 }
 0x15c   :  { %v807_v9 = vpop.eup %806  ;;  %v471_v11 = vsub.f32 1.0, %v805_v31  ;;  %v529_v12 = vadd.f32 %v528_v4, %v478_v3  ;;  %v501_v38 = vmul.f32 %v493_v0, %v485_v29 }
 0x15d   :  { %v809_v13 = vpop.eup %808  ;;  %v511_v14 = vmul.f32 %v807_v9, %v791_v47  ;;  %824 = vrcp.f32 %v389_v7 }
 0x15e   :  { %v811_v15 = vpop.eup %810  ;;  %v479_v16 = vmul.f32 %v471_v11, %v1086_v50  ;;  %826 = vtanh.f32 %v529_v12  ;;  %v535_v17 = vmul.f32 %v805_v31, %v529_v12  ;;  %v450_v32 = vadd.f32 1.0, %v809_v13 }
 0x15f   :  { %v813_v41 = vpop.eup %812  ;;  %v512_v22 = vadd.f32 %v511_v14, %v499_v6  ;;  %v449_v25 = vadd.f32 1.0, %v811_v15 }
 0x160   :  { %v815_v26 = vpop.eup %814  ;;  %v472_v27 = vsub.f32 1.0, %v813_v41  ;;  %v536_v28 = vadd.f32 %v535_v17, %v479_v16 }
 0x161   :  { %v517_v30 = vmul.f32 %v815_v26, %v793_v52  ;;  %513 = vst [vmem:[#allocation9] sm:$0xff] %v512_v22  ;;  %828 = vrcp.f32 %v449_v25  ;;  %v817_v33 = vpop.eup %816  ;;  %v487_v52 = vld [vmem:[#allocation6 + $0x20] sm:$0xff] }
 0x162   :  { %v480_v34 = vmul.f32 %v472_v27, %v1091_v60  ;;  %830 = vtanh.f32 %v536_v28  ;;  %v542_v50 = vmul.f32 %v813_v41, %v536_v28  ;;  %v495_v47 = vsub.f32 1.0, %v817_v33 }
 0x163   :  { %v819_v35 = vpop.eup %818  ;;  %v518_v36 = vadd.f32 %v517_v30, %v500_v21  ;;  %832 = vrcp.f32 %v450_v32 }
 0x164   :  { %v821_v39 = vpop.eup %820  ;;  %v473_v42 = vsub.f32 1.0, %v819_v35  ;;  %v543_v43 = vadd.f32 %v542_v50, %v480_v34  ;;  %v503_v23 = vmul.f32 %v495_v47, %v487_v52 }
 0x165   :  { %520 = vst [vmem:[#allocation9 + $0x8] sm:$0xff] %v518_v36  ;;  %v524_v44 = vmul.f32 %v821_v39, %v801_v1  ;;  %v823_v18 = vpop.eup %822 }
 0x166   :  { %v481_v24 = vmul.f32 %v473_v42, %v1094_v8  ;;  %834 = vtanh.f32 %v543_v43  ;;  %v549_v45 = vmul.f32 %v819_v35, %v543_v43  ;;  %v496_v57 = vsub.f32 1.0, %v823_v18 }
 0x167   :  { %v825_v60 = vpop.eup %824  ;;  %v525_v46 = vadd.f32 %v524_v44, %v501_v38 }
 0x168   :  { %v827_v48 = vpop.eup %826  ;;  %v474_v49 = vsub.f32 1.0, %v825_v60  ;;  %v550_v51 = vadd.f32 %v549_v45, %v481_v24  ;;  %v504_v1 = vmul.f32 %v496_v57, %v488_v62 }
 0x169   :  { %v531_v53 = vmul.f32 %v827_v48, %v1108_v58  ;;  %527 = vst [vmem:[#allocation9 + $0x10] sm:$0xff] %v525_v46 }
 0x16a   :  { %v482_v54 = vmul.f32 %v474_v49, %v1097_v20  ;;  %836 = vtanh.f32 %v550_v51  ;;  %v556_v55 = vmul.f32 %v825_v60, %v550_v51 }
 0x16b   :  { %v829_v8 = vpop.eup %828  ;;  %v532_v56 = vadd.f32 %v531_v53, %v502_v19 }
 0x16c   :  { %v831_v59 = vpop.eup %830  ;;  %v557_v61 = vadd.f32 %v556_v55, %v482_v54  ;;  %v497_v3 = vsub.f32 1.0, %v829_v8 }
 0x16d   :  { %534 = vst [vmem:[#allocation9 + $0x18] sm:$0xff] %v532_v56  ;;  %v538_v63 = vmul.f32 %v831_v59, %v817_v33  ;;  %v833_v58 = vpop.eup %832 }
 0x16e   :  { %838 = vtanh.f32 %v557_v61  ;;  %566 = vst [vmem:[#allocation10] sm:$0xff] %v557_v61 }
 0x16f   :  { %v539_v2 = vadd.f32 %v538_v63, %v503_v23 }
 0x170   :  { %917 = shalt.err (!%p914_p0)
}
 0x171   :  { %s918_s1 = scalar_lea.hbm %s1150_s6, 128 }
 0x172   :  { %p919_p1 = scmp.ne.s32.totalorder %s1150_s6, %s918_s1  ;;  %p922_p2 = scmp.lt.u32.totalorder %s918_s1, %s1150_s6 }
 0x174   :  { %p924_p3 = pnand %p922_p2, %p919_p1 }
 0x176   :  { %927 = shalt.err (!%p924_p3)
}
 0x177   :  { %589 = dma.vmem_to_hbm [thread:$0]  %s587_s17, 128, %s1150_s6, [#allocation11]   ;;  %v835_v20 = vpop.eup %834  ;;  %v489_v4 = vld [vmem:[#allocation6 + $0x30] sm:$0xff]  ;;  %541 = vst [vmem:[#allocation9 + $0x20] sm:$0xff] %v539_v2  ;;  %v498_v6 = vsub.f32 1.0, %v833_v58  ;;  %v490_v10 = vld [vmem:[#allocation6 + $0x38] sm:$0xff] }
 0x178   :  { %v545_v31 = vmul.f32 %v835_v20, %v823_v18  ;;  %v505_v7 = vmul.f32 %v497_v3, %v489_v4  ;;  %v837_v9 = vpop.eup %836  ;;  %s967_s28 = smov [#allocation9]  }
 0x179   :  { %v552_v11 = vmul.f32 %v837_v9, %v829_v8  ;;  %v506_v12 = vmul.f32 %v498_v6, %v490_v10  ;;  %v839_v14 = vpop.eup %838  ;;  %s573_s29 = sshll.u32 %s967_s28, 4  ;;  %s574_s29 = int_to_ptr.vmem [resolvable:$true] %s573_s29 }
 0x17a   :  { %v546_v5 = vadd.f32 %v545_v31, %v504_v1  ;;  %v559_v15 = vmul.f32 %v839_v14, %v833_v58  ;;  %s928_s6 = scalar_lea.vmem %s574_s29, 1024  ;;  %p933_p5 = scmp.lt.s32.totalorder %s574_s29, %s574_s29 }
 0x17b   :  { %v553_v13 = vadd.f32 %v552_v11, %v505_v7  ;;  %p929_p4 = scmp.ne.s32.totalorder %s574_s29, %s928_s6  ;;  %p934_p6 = scmp.lt.s32.totalorder %s928_s6, %s928_s6 }
 0x17c   :  { %548 = vst [vmem:[#allocation9 + $0x28] sm:$0xff] %v546_v5  ;;  %v560_v16 = vadd.f32 %v559_v15, %v506_v12 }
 0x17d   :  { %555 = vst [vmem:[#allocation9 + $0x30] sm:$0xff] %v553_v13  ;;  %p935_p7 = por %p934_p6, %p933_p5 }
 0x17e   :  { %562 = vst [vmem:[#allocation9 + $0x38] sm:$0xff] %v560_v16 }
 0x17f   :  { %p936_p8 = pnand %p935_p7, %p929_p4 }
 0x181   :  { %939 = shalt.err (!%p936_p8)
}
 0x182   :  { %s940_s8 = scalar_lea.hbm %s1149_s5, 1024 }
 0x183   :  { %p941_p9 = scmp.ne.s32.totalorder %s1149_s5, %s940_s8  ;;  %p944_p10 = scmp.lt.u32.totalorder %s940_s8, %s1149_s5 }
 0x185   :  { %p946_p11 = pnand %p944_p10, %p941_p9 }
 0x187   :  { %949 = shalt.err (!%p946_p11)
}
 0x188   :  { %579 = dma.vmem_to_hbm [thread:$0]  %s574_s29, 1024, %s1149_s5, [#allocation5], %s960_s9, %s960_s9, %s961_s10  }
 0x189   :  { %954 = dma.done.wait [#allocation5], 1024  }
 0x18a   :  { %955 = vsyncadd [#allocation5], 4294966272 }
 0x18b   :  { %956 = dma.done.wait [#allocation11], 128  }
 0x18c   :  { %957 = vsyncadd [#allocation11], 4294967168 }
 0x18d   :  { %596 = vsyncpa [#allocation4], 1 }
 0x18e   :  { %597 = vsyncpa [#allocation7], 1 }
 0x18f   :  { %598 = vsyncpa [#allocation5], 1 }
 0x190   :  { %599 = vsyncpa [#allocation11], 1 }

// kernel: tpu_custom_call.1
= control target key start
LH: loop header
LB: loop body
LE: loop exit
PB: predicated region body
PF: predicated region fallthrough
CT: control target
= control target key end

     0   :  { %12 = vsyncpa [#allocation4], 0  ;;  %s1144_s0 = inlined_call_operand.hbm [shape: f32[8,8,128], index: 0, kind: input, shape index: {}]   ;;  %s1145_s1 = inlined_call_operand.hbm [shape: f32[8,8,128], index: 1, kind: input, shape index: {}]   ;;  %s1146_s2 = inlined_call_operand.hbm [shape: f32[128,384], index: 2, kind: input, shape index: {}]   ;;  %s1147_s3 = inlined_call_operand.vmem [shape: f32[2,128], index: 3, kind: input, shape index: {}]   ;;  %s1148_s4 = inlined_call_operand.vmem [shape: f32[8,128], index: 4, kind: input, shape index: {}]   ;;  %s1149_s5 = inlined_call_operand.hbm [shape: f32[8,8,128], index: 5, kind: output, shape index: {0}]   ;;  %s1150_s6 = inlined_call_operand.hbm [shape: f32[8,128], index: 6, kind: output, shape index: {1}]  }
   0x1   :  { %13 = vsyncpa [#allocation7], 0 }
   0x2   :  { %14 = vsyncpa [#allocation5], 0 }
   0x3   :  { %15 = vsyncpa [#allocation11], 0  ;;  %s958_s21 = smov [#allocation6]   ;;  %s959_s23 = smov [#allocation3]  }
   0x4   :  { %s33_s22 = sshll.u32 %s958_s21, 4  ;;  %s21_s24 = sshll.u32 %s959_s23, 4  ;;  %s34_s22 = int_to_ptr.vmem [resolvable:$true] %s33_s22  ;;  %s1003_s24 = int_to_ptr.vmem [resolvable:$true] %s21_s24 }
   0x5   :  { %s840_s27 = scalar_lea.hbm %s1145_s1, 1024 }
   0x6   :  { %p841_p0 = scmp.ne.s32.totalorder %s1145_s1, %s840_s27  ;;  %p844_p1 = scmp.lt.u32.totalorder %s840_s27, %s1145_s1 }
   0x8   :  { %p846_p2 = pnand %p844_p1, %p841_p0 }
   0xa   :  { %849 = shalt.err (!%p846_p2)
}
   0xb   :  { %s850_s8 = scalar_lea.vmem %s34_s22, 1024  ;;  %p855_p4 = scmp.lt.s32.totalorder %s34_s22, %s34_s22 }
   0xc   :  { %p851_p3 = scmp.ne.s32.totalorder %s34_s22, %s850_s8  ;;  %p856_p5 = scmp.lt.s32.totalorder %s850_s8, %s850_s8 }
   0xe   :  { %p857_p6 = por %p856_p5, %p855_p4 }
  0x10   :  { %p858_p7 = pnand %p857_p6, %p851_p3 }
  0x12   :  { %861 = shalt.err (!%p858_p7)
}
  0x13   :  { %s960_s9 = smov 128   ;;  %s961_s10 = smov 8  }
  0x14   :  { %39 = dma.hbm_to_vmem [thread:$0]  %s1145_s1, 1024, %s34_s22, [#allocation7], %s960_s9, %s960_s9, %s961_s10  }
  0x15   :  { %s862_s15 = scalar_lea.hbm %s1144_s0, 1024 }
  0x16   :  { %p863_p8 = scmp.ne.s32.totalorder %s1144_s0, %s862_s15  ;;  %p866_p9 = scmp.lt.u32.totalorder %s862_s15, %s1144_s0 }
  0x18   :  { %p868_p10 = pnand %p866_p9, %p863_p8 }
  0x1a   :  { %871 = shalt.err (!%p868_p10)
}
  0x1b   :  { %s872_s20 = scalar_lea.vmem %s1003_s24, 1024  ;;  %p877_p12 = scmp.lt.s32.totalorder %s1003_s24, %s1003_s24 }
  0x1c   :  { %p873_p11 = scmp.ne.s32.totalorder %s1003_s24, %s872_s20  ;;  %p878_p13 = scmp.lt.s32.totalorder %s872_s20, %s872_s20 }
  0x1e   :  { %p879_p0 = por %p878_p13, %p877_p12 }
  0x20   :  { %p880_p1 = pnand %p879_p0, %p873_p11 }
  0x22   :  { %883 = shalt.err (!%p880_p1)
}
  0x23   :  { %27 = dma.hbm_to_vmem [thread:$0]  %s1144_s0, 1024, %s1003_s24, [#allocation4], %s960_s9, %s960_s9, %s961_s10  }
  0x24   :  { %s962_s22 = smov [#allocation8]   ;;  %s884_s27 = scalar_lea.hbm %s1146_s2, 6144 }
  0x25   :  { %s45_s23 = sshll.u32 %s962_s22, 4  ;;  %p885_p2 = scmp.ne.s32.totalorder %s1146_s2, %s884_s27  ;;  %s46_s23 = int_to_ptr.vmem [resolvable:$true] %s45_s23 }
  0x26   :  { %p888_p3 = scmp.lt.u32.totalorder %s884_s27, %s1146_s2 }
  0x28   :  { %p890_p4 = pnand %p888_p3, %p885_p2 }
  0x2a   :  { %893 = shalt.err (!%p890_p4)
}
  0x2b   :  { %s894_s8 = scalar_lea.vmem %s46_s23, 6144  ;;  %p899_p6 = scmp.lt.s32.totalorder %s46_s23, %s46_s23 }
  0x2c   :  { %p895_p5 = scmp.ne.s32.totalorder %s46_s23, %s894_s8  ;;  %p900_p7 = scmp.lt.s32.totalorder %s894_s8, %s894_s8 }
  0x2e   :  { %p901_p8 = por %p900_p7, %p899_p6 }
  0x30   :  { %p902_p9 = pnand %p901_p8, %p895_p5 }
  0x32   :  { %905 = shalt.err (!%p902_p9)
}
  0x33   :  { %s963_s0 = smov 384   ;;  %s964_s24 = smov 24  }
  0x34   :  { %51 = dma.hbm_to_vmem [thread:$0]  %s1146_s2, 6144, %s46_s23, [#allocation7], %s963_s0, %s963_s0, %s964_s24  }
  0x35   :  { %950 = dma.done.wait [#allocation4], 1024  }
  0x36   :  { %951 = vsyncadd [#allocation4], 4294966272 }
  0x37   :  { %952 = dma.done.wait [#allocation7], 7168  }
  0x38   :  { %953 = vsyncadd [#allocation7], 4294960128  ;;  %v965_v0 = vmov 0.0   ;;  %v80_v1 = vld [vmem:[#allocation8 + $0x8] sm:$0xff]  ;;  %v83_v2 = vld [vmem:[#allocation8 + $0x20] sm:$0xff] }
  0x39   :  { %191 = vmatprep.mubr.f32.mxu0 %v965_v0  ;;  %v79_v3 = vld [vmem:[#allocation8] sm:$0xff]  ;;  %v686_v4 = vpack.c.bf16 %v83_v2, %v80_v1  ;;  %v82_v5 = vld [vmem:[#allocation8 + $0x18] sm:$0xff]  ;;  %v89_v7 = vld [vmem:[#allocation8 + $0x50] sm:$0xff] }
  0x3a   :  { %v86_v6 = vld [vmem:[#allocation8 + $0x38] sm:$0xff]  ;;  %v688_v8 = vpack.c.bf16 %v82_v5, %v79_v3  ;;  %v85_v10 = vld [vmem:[#allocation8 + $0x30] sm:$0xff]  ;;  %v88_v11 = vld [vmem:[#allocation8 + $0x48] sm:$0xff] }
  0x3b   :  { %v690_v9 = vpack.c.bf16 %v89_v7, %v86_v6  ;;  %v92_v12 = vld [vmem:[#allocation8 + $0x68] sm:$0xff]  ;;  %687 = vmatprep.subr.bf16.mxu0 %v686_v4  ;;  %v95_v13 = vld [vmem:[#allocation8 + $0x80] sm:$0xff]  ;;  %v692_v14 = vpack.c.bf16 %v88_v11, %v85_v10  ;;  %v94_v17 = vld [vmem:[#allocation8 + $0x78] sm:$0xff] }
  0x3c   :  { %689 = vmatpush1.bf16.msra.mxu0 %v688_v8  ;;  %v91_v15 = vld [vmem:[#allocation8 + $0x60] sm:$0xff]  ;;  %v694_v16 = vpack.c.bf16 %v95_v13, %v92_v12  ;;  %v81_v18 = vld [vmem:[#allocation8 + $0x10] sm:$0xff]  ;;  %v84_v19 = vld [vmem:[#allocation8 + $0x28] sm:$0xff] }
  0x3d   :  { %691 = vmatprep.subr.bf16.mxu0 %v690_v9  ;;  %v98_v20 = vld [vmem:[#allocation8 + $0x98] sm:$0xff]  ;;  %v101_v21 = vld [vmem:[#allocation8 + $0xb0] sm:$0xff]  ;;  %v718_v22 = vpack.c.bf16 %v84_v19, %v81_v18  ;;  %v87_v23 = vld [vmem:[#allocation8 + $0x40] sm:$0xff]  ;;  %v696_v25 = vpack.c.bf16 %v94_v17, %v91_v15 }
  0x3e   :  { %v90_v24 = vld [vmem:[#allocation8 + $0x58] sm:$0xff]  ;;  %v97_v26 = vld [vmem:[#allocation8 + $0x90] sm:$0xff]  ;;  %v698_v28 = vpack.c.bf16 %v101_v21, %v98_v20  ;;  %v100_v29 = vld [vmem:[#allocation8 + $0xa8] sm:$0xff] }
  0x3f   :  { %719 = vmatprep.subr.bf16.mxu1 %v718_v22  ;;  %v722_v27 = vpack.c.bf16 %v90_v24, %v87_v23  ;;  %v93_v30 = vld [vmem:[#allocation8 + $0x70] sm:$0xff]  ;;  %v96_v31 = vld [vmem:[#allocation8 + $0x88] sm:$0xff]  ;;  %v107_v33 = vld [vmem:[#allocation8 + $0xe0] sm:$0xff]  ;;  %v700_v37 = vpack.c.bf16 %v100_v29, %v97_v26 }
  0x40   :  { %693 = vmatpush1.bf16.msra.mxu0 %v692_v14  ;;  %721 = vmatpush3.bf16.msra.mxu1 %v718_v22  ;;  %v104_v32 = vld [vmem:[#allocation8 + $0xc8] sm:$0xff]  ;;  %v726_v34 = vpack.c.bf16 %v96_v31, %v93_v30  ;;  %v99_v35 = vld [vmem:[#allocation8 + $0xa0] sm:$0xff]  ;;  %v102_v36 = vld [vmem:[#allocation8 + $0xb8] sm:$0xff] }
  0x41   :  { %695 = vmatprep.subr.bf16.mxu0 %v694_v16  ;;  %723 = vmatprep.subr.bf16.mxu1 %v722_v27  ;;  %v702_v38 = vpack.c.bf16 %v107_v33, %v104_v32  ;;  %v103_v39 = vld [vmem:[#allocation8 + $0xc0] sm:$0xff]  ;;  %v106_v40 = vld [vmem:[#allocation8 + $0xd8] sm:$0xff]  ;;  %v113_v42 = vld [vmem:[#allocation8 + $0x110] sm:$0xff]  ;;  %v730_v43 = vpack.c.bf16 %v102_v36, %v99_v35 }
  0x42   :  { %v110_v41 = vld [vmem:[#allocation8 + $0xf8] sm:$0xff]  ;;  %v71_v44 = vld [vmem:[#allocation3] sm:$0xff]  ;;  %v105_v45 = vld [vmem:[#allocation8 + $0xd0] sm:$0xff]  ;;  %v704_v47 = vpack.c.bf16 %v106_v40, %v103_v39 }
  0x43   :  { %v108_v46 = vld [vmem:[#allocation8 + $0xe8] sm:$0xff]  ;;  %674 = vmatprep.mubr.f32.mxu1 %v71_v44  ;;  %v706_v48 = vpack.c.bf16 %v113_v42, %v110_v41  ;;  %v109_v49 = vld [vmem:[#allocation8 + $0xf0] sm:$0xff]  ;;  %v119_v52 = vld [vmem:[#allocation8 + $0x140] sm:$0xff] }
  0x44   :  { %697 = vmatpush1.bf16.msra.mxu0 %v696_v25  ;;  %725 = vmatpush3.bf16.msra.mxu1 %v722_v27  ;;  %v112_v50 = vld [vmem:[#allocation8 + $0x108] sm:$0xff]  ;;  %v734_v53 = vpack.c.bf16 %v108_v46, %v105_v45  ;;  %v111_v54 = vld [vmem:[#allocation8 + $0x100] sm:$0xff]  ;;  %v114_v55 = vld [vmem:[#allocation8 + $0x118] sm:$0xff] }
  0x45   :  { %699 = vmatprep.subr.bf16.mxu0 %v698_v28  ;;  %727 = vmatprep.subr.bf16.mxu1 %v726_v34  ;;  %v116_v51 = vld [vmem:[#allocation8 + $0x128] sm:$0xff]  ;;  %v708_v56 = vpack.c.bf16 %v112_v50, %v109_v49  ;;  %v115_v58 = vld [vmem:[#allocation8 + $0x120] sm:$0xff]  ;;  %v118_v59 = vld [vmem:[#allocation8 + $0x138] sm:$0xff]  ;;  %v738_v62 = vpack.c.bf16 %v114_v55, %v111_v54 }
  0x46   :  { %v710_v57 = vpack.c.bf16 %v119_v52, %v116_v51  ;;  %v122_v60 = vld [vmem:[#allocation8 + $0x158] sm:$0xff]  ;;  %v125_v61 = vld [vmem:[#allocation8 + $0x170] sm:$0xff]  ;;  %v120_v1 = vld [vmem:[#allocation8 + $0x148] sm:$0xff]  ;;  %v712_v2 = vpack.c.bf16 %v118_v59, %v115_v58 }
  0x47   :  { %v117_v63 = vld [vmem:[#allocation8 + $0x130] sm:$0xff]  ;;  %v714_v3 = vpack.c.bf16 %v125_v61, %v122_v60  ;;  %v124_v5 = vld [vmem:[#allocation8 + $0x168] sm:$0xff]  ;;  %v123_v7 = vld [vmem:[#allocation8 + $0x160] sm:$0xff] }
  0x48   :  { %701 = vmatpush1.bf16.msra.mxu0 %v700_v37  ;;  %729 = vmatpush3.bf16.msra.mxu1 %v726_v34  ;;  %v121_v4 = vld [vmem:[#allocation8 + $0x150] sm:$0xff]  ;;  %v742_v6 = vpack.c.bf16 %v120_v1, %v117_v63  ;;  %v126_v8 = vld [vmem:[#allocation8 + $0x178] sm:$0xff]  ;;  %v72_v11 = vld [vmem:[#allocation3 + $0x8] sm:$0xff] }
  0x49   :  { %703 = vmatprep.subr.bf16.mxu0 %v702_v38  ;;  %731 = vmatprep.subr.bf16.mxu1 %v730_v43  ;;  %v716_v9 = vpack.c.bf16 %v124_v5, %v121_v4  ;;  %v746_v10 = vpack.c.bf16 %v126_v8, %v123_v7  ;;  %v73_v12 = vld [vmem:[#allocation3 + $0x10] sm:$0xff]  ;;  %v74_v13 = vld [vmem:[#allocation3 + $0x18] sm:$0xff]  ;;  %v75_v14 = vld [vmem:[#allocation3 + $0x20] sm:$0xff] }
  0x4a   :  { %v76_v15 = vld [vmem:[#allocation3 + $0x28] sm:$0xff]  ;;  %v77_v16 = vld [vmem:[#allocation3 + $0x30] sm:$0xff]  ;;  %v78_v17 = vld [vmem:[#allocation3 + $0x38] sm:$0xff] }
  0x4b   :  { %v1063_v18 = vld [vmem:[%s1147_s3] ss:$0 sm:$0xff]  ;;  %v1073_v24 = vld [vmem:[%s1147_s3 + $0x1] ss:$0 sm:$0xff] }
  0x4c   :  { %705 = vmatpush1.bf16.msra.mxu0 %v704_v47  ;;  %733 = vmatpush3.bf16.msra.mxu1 %v730_v43 }
  0x4d   :  { %707 = vmatprep.subr.bf16.mxu0 %v706_v48  ;;  %735 = vmatprep.subr.bf16.mxu1 %v734_v53 }
  0x50   :  { %709 = vmatpush1.bf16.msra.mxu0 %v708_v56  ;;  %737 = vmatpush3.bf16.msra.mxu1 %v734_v53 }
  0x51   :  { %711 = vmatprep.subr.bf16.mxu0 %v710_v57  ;;  %739 = vmatprep.subr.bf16.mxu1 %v738_v62 }
  0x54   :  { %713 = vmatpush1.bf16.msra.mxu0 %v712_v2  ;;  %741 = vmatpush3.bf16.msra.mxu1 %v738_v62 }
  0x55   :  { %715 = vmatprep.subr.bf16.mxu0 %v714_v3  ;;  %743 = vmatprep.subr.bf16.mxu1 %v742_v6 }
  0x58   :  { %717 = vmatpush1.bf16.msra.mxu0 %v716_v9  ;;  %745 = vmatpush3.bf16.msra.mxu1 %v742_v6 }
  0x59   :  { %747 = vmatprep.subr.bf16.mxu1 %v746_v10 }
  0x5b   :  { %192 = vmatmul.mubr.f32.vlgmr.msra.gmra.mrb[0].mxu0 %v71_v44 }
  0x5c   :  { %197 = vmatprep.mubr.f32.mxu0 %v965_v0  ;;  %749 = vmatpush3.bf16.msra.mxu1 %v746_v10 }
  0x5f   :  { %198 = vmatmul.mubr.f32.gmra.mrb[2].mxu0 %v72_v11  ;;  %675 = vmatmul.mubr.f32.vlgmr.msra.gmra.mrb[0].mxu1 %v72_v11 }
  0x60   :  { %203 = vmatprep.mubr.f32.mxu0 %v965_v0  ;;  %677 = vmatprep.mubr.f32.mxu1 %v73_v12 }
  0x63   :  { %204 = vmatmul.mubr.f32.gmra.mrb[4].mxu0 %v73_v12  ;;  %678 = vmatmul.mubr.f32.gmra.mrb[2].mxu1 %v74_v13 }
  0x64   :  { %209 = vmatprep.mubr.f32.mxu0 %v965_v0  ;;  %680 = vmatprep.mubr.f32.mxu1 %v75_v14 }
  0x67   :  { %210 = vmatmul.mubr.f32.gmra.mrb[6].mxu0 %v74_v13  ;;  %681 = vmatmul.mubr.f32.gmra.mrb[4].mxu1 %v76_v15 }
  0x68   :  { %215 = vmatprep.mubr.f32.mxu0 %v965_v0  ;;  %683 = vmatprep.mubr.f32.mxu1 %v77_v16 }
  0x6b   :  { %216 = vmatmul.mubr.f32.gmra.mrb[8].mxu0 %v75_v14  ;;  %684 = vmatmul.mubr.f32.gmra.mrb[6].mxu1 %v78_v17 }
  0x6c   :  { %221 = vmatprep.mubr.f32.mxu0 %v965_v0 }
  0x6f   :  { %222 = vmatmul.mubr.f32.gmra.mrb[10].mxu0 %v76_v15 }
  0x70   :  { %227 = vmatprep.mubr.f32.mxu0 %v965_v0 }
  0x73   :  { %228 = vmatmul.mubr.f32.gmra.mrb[12].mxu0 %v77_v16 }
  0x74   :  { %233 = vmatprep.mubr.f32.mxu0 %v965_v0 }
  0x77   :  { %234 = vmatmul.mubr.f32.gmra.mrb[14].mxu0 %v78_v17 }
 0x12e   :  { %v1065_v19 = vpop.f32.mrb[0].mxu0 }
 0x12f   :  { %v195_v20 = vpop.f32.mrb[1].mxu0 }
 0x130   :  { %v350_v21 = vadd.f32 %v1063_v18, %v195_v20 }
 0x132   :  { %v601_v22 = vmul.f32 -1.442695, %v350_v21  ;;  %v1068_v23 = vpop.f32.mrb[2].mxu0  ;;  %v676_v25 = vpop.f32.mrb[0].mxu1 }
 0x133   :  { %v201_v0 = vpop.f32.mrb[3].mxu0  ;;  %v412_v27 = vadd.f32 %v676_v25, %v1073_v24  ;;  %v306_v28 = vpop.f32.mrb[1].mxu1 }
 0x134   :  { %760 = vpow2.f32 %v601_v22  ;;  %v351_v26 = vadd.f32 %v1063_v18, %v201_v0  ;;  %v411_v29 = vadd.f32 %v1073_v24, %v306_v28  ;;  %v69_v22 = vld [vmem:[%s1148_s4] sm:$0xff]  ;;  %s966_s4 = smov [#allocation10]  }
 0x135   :  { %v611_v32 = vmul.f32 -1.442695, %v412_v27  ;;  %s586_s17 = sshll.u32 %s966_s4, 4  ;;  %s587_s17 = int_to_ptr.vmem [resolvable:$true] %s586_s17 }
 0x136   :  { %v602_v30 = vmul.f32 -1.442695, %v351_v26  ;;  %v1078_v31 = vpop.f32.mrb[4].mxu0  ;;  %v610_v34 = vmul.f32 -1.442695, %v411_v29  ;;  %v679_v35 = vpop.f32.mrb[2].mxu1  ;;  %p911_p11 = scmp.lt.s32.totalorder %s587_s17, %s587_s17 }
 0x137   :  { %v207_v33 = vpop.f32.mrb[5].mxu0  ;;  %v414_v37 = vadd.f32 %v679_v35, %v1073_v24  ;;  %v316_v38 = vpop.f32.mrb[3].mxu1  ;;  %s906_s18 = scalar_lea.vmem %s587_s17, 128 }
 0x138   :  { %762 = vpow2.f32 %v602_v30  ;;  %v352_v36 = vadd.f32 %v1063_v18, %v207_v33  ;;  %v413_v39 = vadd.f32 %v1073_v24, %v316_v38  ;;  %p907_p10 = scmp.ne.s32.totalorder %s587_s17, %s906_s18  ;;  %p912_p12 = scmp.lt.s32.totalorder %s906_s18, %s906_s18 }
 0x139   :  { %764 = vpow2.f32 %v611_v32  ;;  %v613_v42 = vmul.f32 -1.442695, %v414_v37 }
 0x13a   :  { %v603_v40 = vmul.f32 -1.442695, %v352_v36  ;;  %v1083_v41 = vpop.f32.mrb[6].mxu0  ;;  %766 = vpow2.f32 %v610_v34  ;;  %v612_v44 = vmul.f32 -1.442695, %v413_v39  ;;  %v682_v45 = vpop.f32.mrb[4].mxu1  ;;  %p913_p13 = por %p912_p12, %p911_p11 }
 0x13b   :  { %v213_v43 = vpop.f32.mrb[7].mxu0  ;;  %v326_v47 = vpop.f32.mrb[5].mxu1  ;;  %v416_v51 = vadd.f32 %v682_v45, %v1073_v24 }
 0x13c   :  { %768 = vpow2.f32 %v603_v40  ;;  %v353_v46 = vadd.f32 %v1063_v18, %v213_v43  ;;  %v415_v54 = vadd.f32 %v1073_v24, %v326_v47  ;;  %p914_p0 = pnand %p913_p13, %p907_p10 }
 0x13d   :  { %770 = vpow2.f32 %v613_v42  ;;  %v615_v61 = vmul.f32 -1.442695, %v416_v51 }
 0x13e   :  { %v761_v48 = vpop.eup %760  ;;  %v604_v49 = vmul.f32 -1.442695, %v353_v46  ;;  %v1086_v50 = vpop.f32.mrb[8].mxu0  ;;  %772 = vpow2.f32 %v612_v44  ;;  %v614_v2 = vmul.f32 -1.442695, %v415_v54 }
 0x13f   :  { %v382_v52 = vadd.f32 1.0, %v761_v48  ;;  %v219_v53 = vpop.f32.mrb[9].mxu0  ;;  %v685_v55 = vpop.f32.mrb[6].mxu1 }
 0x140   :  { %774 = vpow2.f32 %v604_v49  ;;  %v354_v56 = vadd.f32 %v1063_v18, %v219_v53  ;;  %v336_v57 = vpop.f32.mrb[7].mxu1  ;;  %v418_v27 = vadd.f32 %v685_v55, %v1073_v24 }
 0x141   :  { %776 = vrcp.f32 %v382_v52  ;;  %v417_v30 = vadd.f32 %v1073_v24, %v336_v57 }
 0x142   :  { %v763_v58 = vpop.eup %762  ;;  %v605_v59 = vmul.f32 -1.442695, %v354_v56  ;;  %v1091_v60 = vpop.f32.mrb[10].mxu0  ;;  %v617_v38 = vmul.f32 -1.442695, %v418_v27 }
 0x143   :  { %v765_v62 = vpop.eup %764  ;;  %v383_v63 = vadd.f32 1.0, %v763_v58  ;;  %v225_v1 = vpop.f32.mrb[11].mxu0  ;;  %v616_v43 = vmul.f32 -1.442695, %v417_v30 }
 0x144   :  { %v767_v3 = vpop.eup %766  ;;  %778 = vpow2.f32 %v605_v59  ;;  %v355_v4 = vadd.f32 %v1063_v18, %v225_v1  ;;  %v444_v11 = vadd.f32 1.0, %v765_v62  ;;  %v483_v62 = vld [vmem:[#allocation6] sm:$0xff] }
 0x145   :  { %780 = vrcp.f32 %v383_v63  ;;  %v443_v6 = vadd.f32 1.0, %v767_v3 }
 0x146   :  { %v769_v5 = vpop.eup %768  ;;  %v606_v7 = vmul.f32 -1.442695, %v355_v4  ;;  %v1094_v8 = vpop.f32.mrb[12].mxu0  ;;  %782 = vpow2.f32 %v615_v61 }
 0x147   :  { %v771_v9 = vpop.eup %770  ;;  %v384_v10 = vadd.f32 1.0, %v769_v5  ;;  %v231_v12 = vpop.f32.mrb[13].mxu0  ;;  %784 = vpow2.f32 %v614_v2 }
 0x148   :  { %v773_v13 = vpop.eup %772  ;;  %786 = vpow2.f32 %v606_v7  ;;  %v356_v14 = vadd.f32 %v1063_v18, %v231_v12  ;;  %v446_v16 = vadd.f32 1.0, %v771_v9 }
 0x149   :  { %788 = vrcp.f32 %v384_v10  ;;  %v445_v25 = vadd.f32 1.0, %v773_v13  ;;  %v484_v10 = vld [vmem:[#allocation6 + $0x8] sm:$0xff] }
 0x14a   :  { %v775_v15 = vpop.eup %774  ;;  %790 = vrcp.f32 %v443_v6  ;;  %v607_v17 = vmul.f32 -1.442695, %v356_v14  ;;  %v1097_v20 = vpop.f32.mrb[14].mxu0 }
 0x14b   :  { %v777_v21 = vpop.eup %776  ;;  %v385_v0 = vadd.f32 1.0, %v775_v15  ;;  %792 = vrcp.f32 %v444_v11  ;;  %v237_v26 = vpop.f32.mrb[15].mxu0 }
 0x14c   :  { %v467_v28 = vsub.f32 1.0, %v777_v21  ;;  %794 = vpow2.f32 %v607_v17  ;;  %v357_v29 = vadd.f32 %v1063_v18, %v237_v26  ;;  %v508_v34 = vmul.f32 %v777_v21, %v69_v22 }
 0x14d   :  { %796 = vrcp.f32 %v385_v0 }
 0x14e   :  { %v779_v32 = vpop.eup %778  ;;  %v475_v33 = vmul.f32 %v467_v28, %v1065_v19  ;;  %798 = vrcp.f32 %v446_v16  ;;  %v608_v35 = vmul.f32 -1.442695, %v357_v29  ;;  %v485_v29 = vld [vmem:[#allocation6 + $0x10] sm:$0xff] }
 0x14f   :  { %v781_v36 = vpop.eup %780  ;;  %v386_v37 = vadd.f32 1.0, %v779_v32  ;;  %800 = vrcp.f32 %v445_v25 }
 0x150   :  { %v783_v39 = vpop.eup %782  ;;  %v468_v40 = vsub.f32 1.0, %v781_v36  ;;  %v509_v42 = vadd.f32 %v508_v34, %v475_v33  ;;  %802 = vpow2.f32 %v608_v35 }
 0x151   :  { %v785_v44 = vpop.eup %784  ;;  %804 = vrcp.f32 %v386_v37  ;;  %v448_v63 = vadd.f32 1.0, %v783_v39 }
 0x152   :  { %v787_v18 = vpop.eup %786  ;;  %v476_v24 = vmul.f32 %v468_v40, %v1068_v23  ;;  %806 = vtanh.f32 %v509_v42  ;;  %v514_v45 = vmul.f32 %v781_v36, %v509_v42  ;;  %v447_v51 = vadd.f32 1.0, %v785_v44  ;;  %v486_v40 = vld [vmem:[#allocation6 + $0x18] sm:$0xff] }
 0x153   :  { %v789_v19 = vpop.eup %788  ;;  %v387_v46 = vadd.f32 1.0, %v787_v18  ;;  %808 = vpow2.f32 %v617_v38 }
 0x154   :  { %v791_v47 = vpop.eup %790  ;;  %v469_v48 = vsub.f32 1.0, %v789_v19  ;;  %v515_v49 = vadd.f32 %v514_v45, %v476_v24  ;;  %810 = vpow2.f32 %v616_v43 }
 0x155   :  { %v793_v52 = vpop.eup %792  ;;  %812 = vrcp.f32 %v387_v46  ;;  %v491_v57 = vsub.f32 1.0, %v791_v47 }
 0x156   :  { %v795_v53 = vpop.eup %794  ;;  %v477_v54 = vmul.f32 %v469_v48, %v1078_v31  ;;  %814 = vtanh.f32 %v515_v49  ;;  %v521_v55 = vmul.f32 %v789_v19, %v515_v49  ;;  %v492_v5 = vsub.f32 1.0, %v793_v52 }
 0x157   :  { %v797_v56 = vpop.eup %796  ;;  %v388_v23 = vadd.f32 1.0, %v795_v53  ;;  %816 = vrcp.f32 %v447_v51  ;;  %v499_v6 = vmul.f32 %v491_v57, %v483_v62  ;;  %v488_v62 = vld [vmem:[#allocation6 + $0x28] sm:$0xff] }
 0x158   :  { %v1108_v58 = vpop.eup %798  ;;  %v470_v59 = vsub.f32 1.0, %v797_v56  ;;  %v522_v61 = vadd.f32 %v521_v55, %v477_v54  ;;  %v500_v21 = vmul.f32 %v492_v5, %v484_v10 }
 0x159   :  { %v801_v1 = vpop.eup %800  ;;  %818 = vrcp.f32 %v388_v23  ;;  %v494_v37 = vsub.f32 1.0, %v1108_v58 }
 0x15a   :  { %v803_v2 = vpop.eup %802  ;;  %v478_v3 = vmul.f32 %v470_v59, %v1083_v41  ;;  %820 = vtanh.f32 %v522_v61  ;;  %v528_v4 = vmul.f32 %v797_v56, %v522_v61  ;;  %v493_v0 = vsub.f32 1.0, %v801_v1 }
 0x15b   :  { %v805_v31 = vpop.eup %804  ;;  %v389_v7 = vadd.f32 1.0, %v803_v2  ;;  %822 = vrcp.f32 %v448_v63  ;;  %v502_v19 = vmul.f32 %v494_v37, %v486_v40 }
 0x15c   :  { %v807_v9 = vpop.eup %806  ;;  %v471_v11 = vsub.f32 1.0, %v805_v31  ;;  %v529_v12 = vadd.f32 %v528_v4, %v478_v3  ;;  %v501_v38 = vmul.f32 %v493_v0, %v485_v29 }
 0x15d   :  { %v809_v13 = vpop.eup %808  ;;  %v511_v14 = vmul.f32 %v807_v9, %v791_v47  ;;  %824 = vrcp.f32 %v389_v7 }
 0x15e   :  { %v811_v15 = vpop.eup %810  ;;  %v479_v16 = vmul.f32 %v471_v11, %v1086_v50  ;;  %826 = vtanh.f32 %v529_v12  ;;  %v535_v17 = vmul.f32 %v805_v31, %v529_v12  ;;  %v450_v32 = vadd.f32 1.0, %v809_v13 }
 0x15f   :  { %v813_v41 = vpop.eup %812  ;;  %v512_v22 = vadd.f32 %v511_v14, %v499_v6  ;;  %v449_v25 = vadd.f32 1.0, %v811_v15 }
 0x160   :  { %v815_v26 = vpop.eup %814  ;;  %v472_v27 = vsub.f32 1.0, %v813_v41  ;;  %v536_v28 = vadd.f32 %v535_v17, %v479_v16 }
 0x161   :  { %v517_v30 = vmul.f32 %v815_v26, %v793_v52  ;;  %513 = vst [vmem:[#allocation9] sm:$0xff] %v512_v22  ;;  %828 = vrcp.f32 %v449_v25  ;;  %v817_v33 = vpop.eup %816  ;;  %v487_v52 = vld [vmem:[#allocation6 + $0x20] sm:$0xff] }
 0x162   :  { %v480_v34 = vmul.f32 %v472_v27, %v1091_v60  ;;  %830 = vtanh.f32 %v536_v28  ;;  %v542_v50 = vmul.f32 %v813_v41, %v536_v28  ;;  %v495_v47 = vsub.f32 1.0, %v817_v33 }
 0x163   :  { %v819_v35 = vpop.eup %818  ;;  %v518_v36 = vadd.f32 %v517_v30, %v500_v21  ;;  %832 = vrcp.f32 %v450_v32 }
 0x164   :  { %v821_v39 = vpop.eup %820  ;;  %v473_v42 = vsub.f32 1.0, %v819_v35  ;;  %v543_v43 = vadd.f32 %v542_v50, %v480_v34  ;;  %v503_v23 = vmul.f32 %v495_v47, %v487_v52 }
 0x165   :  { %520 = vst [vmem:[#allocation9 + $0x8] sm:$0xff] %v518_v36  ;;  %v524_v44 = vmul.f32 %v821_v39, %v801_v1  ;;  %v823_v18 = vpop.eup %822 }
 0x166   :  { %v481_v24 = vmul.f32 %v473_v42, %v1094_v8  ;;  %834 = vtanh.f32 %v543_v43  ;;  %v549_v45 = vmul.f32 %v819_v35, %v543_v43  ;;  %v496_v57 = vsub.f32 1.0, %v823_v18 }
 0x167   :  { %v825_v60 = vpop.eup %824  ;;  %v525_v46 = vadd.f32 %v524_v44, %v501_v38 }
 0x168   :  { %v827_v48 = vpop.eup %826  ;;  %v474_v49 = vsub.f32 1.0, %v825_v60  ;;  %v550_v51 = vadd.f32 %v549_v45, %v481_v24  ;;  %v504_v1 = vmul.f32 %v496_v57, %v488_v62 }
 0x169   :  { %v531_v53 = vmul.f32 %v827_v48, %v1108_v58  ;;  %527 = vst [vmem:[#allocation9 + $0x10] sm:$0xff] %v525_v46 }
 0x16a   :  { %v482_v54 = vmul.f32 %v474_v49, %v1097_v20  ;;  %836 = vtanh.f32 %v550_v51  ;;  %v556_v55 = vmul.f32 %v825_v60, %v550_v51 }
 0x16b   :  { %v829_v8 = vpop.eup %828  ;;  %v532_v56 = vadd.f32 %v531_v53, %v502_v19 }
 0x16c   :  { %v831_v59 = vpop.eup %830  ;;  %v557_v61 = vadd.f32 %v556_v55, %v482_v54  ;;  %v497_v3 = vsub.f32 1.0, %v829_v8 }
 0x16d   :  { %534 = vst [vmem:[#allocation9 + $0x18] sm:$0xff] %v532_v56  ;;  %v538_v63 = vmul.f32 %v831_v59, %v817_v33  ;;  %v833_v58 = vpop.eup %832 }
 0x16e   :  { %838 = vtanh.f32 %v557_v61  ;;  %566 = vst [vmem:[#allocation10] sm:$0xff] %v557_v61 }
 0x16f   :  { %v539_v2 = vadd.f32 %v538_v63, %v503_v23 }
 0x170   :  { %917 = shalt.err (!%p914_p0)
}
 0x171   :  { %s918_s1 = scalar_lea.hbm %s1150_s6, 128 }
 0x172   :  { %p919_p1 = scmp.ne.s32.totalorder %s1150_s6, %s918_s1  ;;  %p922_p2 = scmp.lt.u32.totalorder %s918_s1, %s1150_s6 }
 0x174   :  { %p924_p3 = pnand %p922_p2, %p919_p1 }
 0x176   :  { %927 = shalt.err (!%p924_p3)
}
 0x177   :  { %589 = dma.vmem_to_hbm [thread:$0]  %s587_s17, 128, %s1150_s6, [#allocation11]   ;;  %v835_v20 = vpop.eup %834  ;;  %v489_v4 = vld [vmem:[#allocation6 + $0x30] sm:$0xff]  ;;  %541 = vst [vmem:[#allocation9 + $0x20] sm:$0xff] %v539_v2  ;;  %v498_v6 = vsub.f32 1.0, %v833_v58  ;;  %v490_v10 = vld [vmem:[#allocation6 + $0x38] sm:$0xff] }
 0x178   :  { %v545_v31 = vmul.f32 %v835_v20, %v823_v18  ;;  %v505_v7 = vmul.f32 %v497_v3, %v489_v4  ;;  %v837_v9 = vpop.eup %836  ;;  %s967_s28 = smov [#allocation9]  }
 0x179   :  { %v552_v11 = vmul.f32 %v837_v9, %v829_v8  ;;  %v506_v12 = vmul.f32 %v498_v6, %v490_v10  ;;  %v839_v14 = vpop.eup %838  ;;  %s573_s29 = sshll.u32 %s967_s28, 4  ;;  %s574_s29 = int_to_ptr.vmem [resolvable:$true] %s573_s29 }
 0x17a   :  { %v546_v5 = vadd.f32 %v545_v31, %v504_v1  ;;  %v559_v15 = vmul.f32 %v839_v14, %v833_v58  ;;  %s928_s6 = scalar_lea.vmem %s574_s29, 1024  ;;  %p933_p5 = scmp.lt.s32.totalorder %s574_s29, %s574_s29 }
 0x17b   :  { %v553_v13 = vadd.f32 %v552_v11, %v505_v7  ;;  %p929_p4 = scmp.ne.s32.totalorder %s574_s29, %s928_s6  ;;  %p934_p6 = scmp.lt.s32.totalorder %s928_s6, %s928_s6 }
 0x17c   :  { %548 = vst [vmem:[#allocation9 + $0x28] sm:$0xff] %v546_v5  ;;  %v560_v16 = vadd.f32 %v559_v15, %v506_v12 }
 0x17d   :  { %555 = vst [vmem:[#allocation9 + $0x30] sm:$0xff] %v553_v13  ;;  %p935_p7 = por %p934_p6, %p933_p5 }
 0x17e   :  { %562 = vst [vmem:[#allocation9 + $0x38] sm:$0xff] %v560_v16 }
 0x17f   :  { %p936_p8 = pnand %p935_p7, %p929_p4 }
 0x181   :  { %939 = shalt.err (!%p936_p8)
}
 0x182   :  { %s940_s8 = scalar_lea.hbm %s1149_s5, 1024 }
 0x183   :  { %p941_p9 = scmp.ne.s32.totalorder %s1149_s5, %s940_s8  ;;  %p944_p10 = scmp.lt.u32.totalorder %s940_s8, %s1149_s5 }
 0x185   :  { %p946_p11 = pnand %p944_p10, %p941_p9 }
 0x187   :  { %949 = shalt.err (!%p946_p11)
}
 0x188   :  { %579 = dma.vmem_to_hbm [thread:$0]  %s574_s29, 1024, %s1149_s5, [#allocation5], %s960_s9, %s960_s9, %s961_s10  }
 0x189   :  { %954 = dma.done.wait [#allocation5], 1024  }
 0x18a   :  { %955 = vsyncadd [#allocation5], 4294966272 }
 0x18b   :  { %956 = dma.done.wait [#allocation11], 128  }
 0x18c   :  { %957 = vsyncadd [#allocation11], 4294967168 }
 0x18d   :  { %596 = vsyncpa [#allocation4], 1 }
 0x18e   :  { %597 = vsyncpa [#allocation7], 1 }
 0x18f   :  { %598 = vsyncpa [#allocation5], 1 }
 0x190   :  { %599 = vsyncpa [#allocation11], 1 }

</bundles_post_ra>
